<compile_context>
chip_gen: v7x
topology: tpu7x:2x2x1
jax: 0.10.0
libtpu: 0.0.40
codegen_flags: <defaults>
</compile_context>

<pallas_src>
import jax
import jax.numpy as jnp
from jax.experimental import pallas as pl
from jax.experimental.pallas import tpu as pltpu

EMBED = 32          # embed_dim (small demo size; module default is 768)
HEADS = 4           # num_heads
HEAD_DIM = EMBED // HEADS
SEQ = 8
BATCH = 2
EPS = 1e-5
SELU_ALPHA = 1.6732632423543772
SELU_SCALE = 1.0507009873554805


def layer_kernel(x_ref, inwT_ref, inb_ref, outwT_ref, outb_ref,
                 w1T_ref, b1_ref, w2T_ref, b2_ref,
                 y_ref, attn_ref):
    x = x_ref[...]                                   # (B*S, E) f32

    def norm(v):
        # LayerNorm without affine: gamma/beta are folded into the following weights.
        m = jnp.mean(v, axis=-1, keepdims=True)
        c = v - m
        return c * jax.lax.rsqrt(jnp.mean(c * c, axis=-1, keepdims=True) + EPS)

    # ---- self-attention block (pre-norm; LN1 affine + 1/sqrt(hd) folded into W_in) ----
    qkv = jnp.dot(norm(x).astype(jnp.bfloat16), inwT_ref[...],
                  preferred_element_type=jnp.float32) + inb_ref[...]   # (B*S, 3E) f32

    ctx_blocks = []
    attn_blocks = []
    for b in range(BATCH):                           # static, tiny
        r0 = b * SEQ
        # hoist the sublane (row) slice out of the head loop; only lane slices inside
        qb = qkv[r0:r0 + SEQ, 0 * EMBED:1 * EMBED].astype(jnp.bfloat16)   # pre-scaled
        kb = qkv[r0:r0 + SEQ, 1 * EMBED:2 * EMBED].astype(jnp.bfloat16)
        vb = qkv[r0:r0 + SEQ, 2 * EMBED:3 * EMBED].astype(jnp.bfloat16)
        attn_acc = jnp.zeros((SEQ, SEQ), jnp.float32)
        ctx_heads = []
        for h in range(HEADS):                       # static, tiny
            c0 = h * HEAD_DIM
            qh = qb[:, c0:c0 + HEAD_DIM]
            kh = kb[:, c0:c0 + HEAD_DIM]
            vh = vb[:, c0:c0 + HEAD_DIM]
            # q @ k^T with NO explicit transpose: contract head_dim of both operands.
            s = jax.lax.dot_general(qh, kh,
                                    dimension_numbers=(((1,), (1,)), ((), ())),
                                    preferred_element_type=jnp.float32)  # (S, S) f32
            s = s - jnp.max(s, axis=-1, keepdims=True)
            e = jnp.exp(s)
            p = e * pl.reciprocal(jnp.sum(e, axis=-1, keepdims=True), approx=True)
            attn_acc = attn_acc + p
            ctx_heads.append(jnp.dot(p.astype(jnp.bfloat16), vh,
                                     preferred_element_type=jnp.float32))
        ctx_blocks.append(jnp.concatenate(ctx_heads, axis=-1))   # (S, E), lane concat
        attn_blocks.append(attn_acc * (1.0 / HEADS))             # PyTorch head-average
    ctx = jnp.concatenate(ctx_blocks, axis=0)                    # (B*S, E) stays a value
    attn_ref[...] = jnp.concatenate(attn_blocks, axis=0)         # one full-array store

    sa = jnp.dot(ctx.astype(jnp.bfloat16), outwT_ref[...],
                 preferred_element_type=jnp.float32) + outb_ref[...]
    x2 = x + sa                                      # residual 1 (dropout1 = identity)

    # ---- feed-forward block (pre-norm; LN2 affine folded into linear1) ----
    h1 = jnp.dot(norm(x2).astype(jnp.bfloat16), w1T_ref[...],
                 preferred_element_type=jnp.float32) + b1_ref[...]
    act = SELU_SCALE * jnp.where(h1 > 0, h1, SELU_ALPHA * (jnp.exp(h1) - 1.0))
    ff = jnp.dot(act.astype(jnp.bfloat16), w2T_ref[...],
                 preferred_element_type=jnp.float32) + b2_ref[...]
    y_ref[...] = x2 + ff                             # residual 2 (dropout2 = identity)


def lmodel_forward(x, packed):
    B, S, E = x.shape
    x2d = x.reshape(B * S, E)                        # free wrapper-side reshape

    # advisory cost estimate for the XLA scheduler around this tiny custom call
    flops = 2 * (B * S) * E * (3 * E)                      # in-proj
    flops += 2 * 2 * B * HEADS * S * S * HEAD_DIM          # scores + context
    flops += 3 * 2 * (B * S) * E * E                       # out-proj, linear1, linear2
    transcendentals = B * HEADS * S * S + (B * S) * E + (B * S) * (HEADS + 2)
    bytes_io = (x2d.size * 4 + (B * S) * (E + S) * 4
                + sum(int(p.size) * p.dtype.itemsize for p in packed))

    vmem_spec = lambda: pl.BlockSpec(memory_space=pltpu.MemorySpace.VMEM)
    y2d, attn2d = pl.pallas_call(
        layer_kernel,
        out_shape=(jax.ShapeDtypeStruct((B * S, E), jnp.float32),
                   jax.ShapeDtypeStruct((B * S, S), jnp.float32)),
        in_specs=[vmem_spec() for _ in range(1 + len(packed))],
        out_specs=(vmem_spec(), vmem_spec()),
        cost_estimate=pl.CostEstimate(flops=flops,
                                      transcendentals=transcendentals,
                                      bytes_accessed=bytes_io),
    )(x2d, *packed)
    return y2d.reshape(B, S, E), attn2d.reshape(B, S, S)


def make_params(key):
    ks = jax.random.split(key, 12)
    s = 0.05
    in_proj_w = jax.random.normal(ks[0], (3 * EMBED, EMBED), jnp.float32) * s
    in_proj_b = jax.random.normal(ks[1], (3 * EMBED,), jnp.float32) * s
    out_w = jax.random.normal(ks[2], (EMBED, EMBED), jnp.float32) * s
    out_b = jax.random.normal(ks[3], (EMBED,), jnp.float32) * s
    w1 = jax.random.normal(ks[4], (EMBED, EMBED), jnp.float32) * s
    b1 = jax.random.normal(ks[5], (EMBED,), jnp.float32) * s
    w2 = jax.random.normal(ks[6], (EMBED, EMBED), jnp.float32) * s
    b2 = jax.random.normal(ks[7], (EMBED,), jnp.float32) * s
    # non-trivial LN affine so the weight-folding is actually exercised
    ln1_g = 1.0 + 0.1 * jax.random.normal(ks[8], (EMBED,), jnp.float32)
    ln1_b = 0.1 * jax.random.normal(ks[9], (EMBED,), jnp.float32)
    ln2_g = 1.0 + 0.1 * jax.random.normal(ks[10], (EMBED,), jnp.float32)
    ln2_b = 0.1 * jax.random.normal(ks[11], (EMBED,), jnp.float32)
    raw = dict(in_proj_w=in_proj_w, in_proj_b=in_proj_b, out_w=out_w, out_b=out_b,
               w1=w1, b1=b1, w2=w2, b2=b2,
               ln1_g=ln1_g, ln1_b=ln1_b, ln2_g=ln2_g, ln2_b=ln2_b)

    # ---- kernel-friendly packing: transposed bf16 weights, folded LN affine & scale ----
    scale = HEAD_DIM ** -0.5
    inwT = in_proj_w.T                                        # (E, 3E)
    inb_fold = ln1_b @ inwT + in_proj_b                       # beta folded into bias
    inwT_fold = ln1_g[:, None] * inwT                         # gamma folded into rows
    col_scale = jnp.concatenate([jnp.full((EMBED,), scale, jnp.float32),
                                 jnp.ones((2 * EMBED,), jnp.float32)])
    inwT_fold = inwT_fold * col_scale[None, :]                # 1/sqrt(hd) into Q cols
    inb_fold = inb_fold * col_scale

    w1T_fold = ln2_g[:, None] * w1.T                          # LN2 gamma into linear1
    b1_fold = ln2_b @ w1.T + b1                               # LN2 beta into linear1 bias

    packed = (
        inwT_fold.astype(jnp.bfloat16),   # (E, 3E) bf16 -> single-pass MXU, half DMA
        inb_fold[None, :],                # (1, 3E) f32 (added after f32 accumulation)
        out_w.T.astype(jnp.bfloat16),     # (E, E)
        out_b[None, :],                   # (1, E)
        w1T_fold.astype(jnp.bfloat16), b1_fold[None, :],
        w2.T.astype(jnp.bfloat16), b2[None, :],
    )
    return raw, packed


def reference_forward(x, p):
    """Pure-JAX f32 reference mirroring the PyTorch module (eval mode), unfused math."""
    def ln(v, g, b):
        m = jnp.mean(v, -1, keepdims=True)
        var = jnp.mean((v - m) ** 2, -1, keepdims=True)
        return (v - m) / jnp.sqrt(var + EPS) * g + b

    xn1 = ln(x, p["ln1_g"], p["ln1_b"])
    qkv = xn1 @ p["in_proj_w"].T + p["in_proj_b"]
    q, k, v = jnp.split(qkv, 3, axis=-1)
    B, S, _ = x.shape
    qh = q.reshape(B, S, HEADS, HEAD_DIM).transpose(0, 2, 1, 3)
    kh = k.reshape(B, S, HEADS, HEAD_DIM).transpose(0, 2, 1, 3)
    vh = v.reshape(B, S, HEADS, HEAD_DIM).transpose(0, 2, 1, 3)
    scores = jnp.einsum("bhqd,bhkd->bhqk", qh, kh) / jnp.sqrt(jnp.float32(HEAD_DIM))
    probs = jax.nn.softmax(scores, axis=-1)
    ctx = jnp.einsum("bhqk,bhkd->bhqd", probs, vh).transpose(0, 2, 1, 3).reshape(B, S, EMBED)
    sa = ctx @ p["out_w"].T + p["out_b"]
    x2 = x + sa
    xn2 = ln(x2, p["ln2_g"], p["ln2_b"])
    h1 = xn2 @ p["w1"].T + p["b1"]
    selu = SELU_SCALE * jnp.where(h1 > 0, h1, SELU_ALPHA * (jnp.exp(h1) - 1.0))
    ff = selu @ p["w2"].T + p["b2"]
    return x2 + ff, jnp.mean(probs, axis=1)


if __name__ == "__main__":
    key = jax.random.PRNGKey(0)
    kx, kp = jax.random.split(key)
    x = jax.random.normal(kx, (BATCH, SEQ, EMBED), jnp.float32)
    raw_params, packed_params = make_params(kp)

    text, attn_w = jax.block_until_ready(lmodel_forward(x, packed_params))

    ref_text, ref_attn = reference_forward(x, raw_params)
    # tolerance loosened vs f32-exact: bf16 MXU operands + approx EUP reciprocal
    assert jnp.allclose(text, ref_text, atol=1e-2, rtol=1e-2)
    assert jnp.allclose(attn_w, ref_attn, atol=1e-2, rtol=1e-2)
    assert text.shape == (BATCH, SEQ, EMBED) and attn_w.shape == (BATCH, SEQ, SEQ)
    print("KERNEL_OK")
</pallas_src>

<mosaic_0001>
module attributes {stable_mosaic.version = 11 : i64} {
  func.func @layer_kernel(%arg0: memref<16x32xf32, #tpu.memory_space<vmem>>, %arg1: memref<32x96xbf16, #tpu.memory_space<vmem>>, %arg2: memref<1x96xf32, #tpu.memory_space<vmem>>, %arg3: memref<32x32xbf16, #tpu.memory_space<vmem>>, %arg4: memref<1x32xf32, #tpu.memory_space<vmem>>, %arg5: memref<32x32xbf16, #tpu.memory_space<vmem>>, %arg6: memref<1x32xf32, #tpu.memory_space<vmem>>, %arg7: memref<32x32xbf16, #tpu.memory_space<vmem>>, %arg8: memref<1x32xf32, #tpu.memory_space<vmem>>, %arg9: memref<16x32xf32, #tpu.memory_space<vmem>>, %arg10: memref<16x8xf32, #tpu.memory_space<vmem>>) attributes {dimension_semantics = [], scalar_prefetch = 0 : i64, scratch_operands = 0 : i64, tpu.core_type = #tpu.core_type<tc>} {
    %c0 = arith.constant 0 : index
    %c0_0 = arith.constant 0 : index
    %0 = vector.load %arg0[%c0, %c0_0] : memref<16x32xf32, #tpu.memory_space<vmem>>, vector<16x32xf32>
    %cst = arith.constant dense<0.000000e+00> : vector<16xf32>
    %1 = vector.multi_reduction <add>, %0, %cst [1] : vector<16x32xf32> to vector<16xf32>
    %2 = vector.shape_cast %1 : vector<16xf32> to vector<16x1xf32>
    %cst_1 = arith.constant 3.200000e+01 : f32
    %3 = vector.broadcast %cst_1 : f32 to vector<16x1xf32>
    %4 = arith.divf %2, %3 : vector<16x1xf32>
    %5 = vector.broadcast %4 : vector<16x1xf32> to vector<16x32xf32>
    %6 = arith.subf %0, %5 : vector<16x32xf32>
    %7 = arith.mulf %6, %6 : vector<16x32xf32>
    %cst_2 = arith.constant dense<0.000000e+00> : vector<16xf32>
    %8 = vector.multi_reduction <add>, %7, %cst_2 [1] : vector<16x32xf32> to vector<16xf32>
    %9 = vector.shape_cast %8 : vector<16xf32> to vector<16x1xf32>
    %cst_3 = arith.constant 3.200000e+01 : f32
    %10 = vector.broadcast %cst_3 : f32 to vector<16x1xf32>
    %11 = arith.divf %9, %10 : vector<16x1xf32>
    %cst_4 = arith.constant 9.99999974E-6 : f32
    %12 = vector.broadcast %cst_4 : f32 to vector<16x1xf32>
    %13 = arith.addf %11, %12 : vector<16x1xf32>
    %14 = math.rsqrt %13 : vector<16x1xf32>
    %15 = vector.broadcast %14 : vector<16x1xf32> to vector<16x32xf32>
    %16 = arith.mulf %6, %15 : vector<16x32xf32>
    %17 = arith.truncf %16 : vector<16x32xf32> to vector<16x32xbf16>
    %c0_5 = arith.constant 0 : index
    %c0_6 = arith.constant 0 : index
    %18 = vector.load %arg1[%c0_5, %c0_6] : memref<32x96xbf16, #tpu.memory_space<vmem>>, vector<32x96xbf16>
    %cst_7 = arith.constant dense<0.000000e+00> : vector<16x96xf32>
    %19 = tpu.matmul %17, %18, %cst_7 {dimension_numbers = #tpu.dot_dimension_numbers<[1], [0], [0], [1], [0, 0, 1, 1], [], []>} : vector<16x32xbf16>, vector<32x96xbf16>, vector<16x96xf32> -> vector<16x96xf32>
    %c0_8 = arith.constant 0 : index
    %c0_9 = arith.constant 0 : index
    %20 = vector.load %arg2[%c0_8, %c0_9] : memref<1x96xf32, #tpu.memory_space<vmem>>, vector<1x96xf32>
    %21 = vector.broadcast %20 : vector<1x96xf32> to vector<16x96xf32>
    %22 = arith.addf %19, %21 : vector<16x96xf32>
    %23 = vector.extract_strided_slice %22 {offsets = [0, 0], sizes = [8, 32], strides = [1, 1]} : vector<16x96xf32> to vector<8x32xf32>
    %24 = arith.truncf %23 : vector<8x32xf32> to vector<8x32xbf16>
    %25 = vector.extract_strided_slice %22 {offsets = [0, 32], sizes = [8, 32], strides = [1, 1]} : vector<16x96xf32> to vector<8x32xf32>
    %26 = arith.truncf %25 : vector<8x32xf32> to vector<8x32xbf16>
    %27 = vector.extract_strided_slice %22 {offsets = [0, 64], sizes = [8, 32], strides = [1, 1]} : vector<16x96xf32> to vector<8x32xf32>
    %28 = arith.truncf %27 : vector<8x32xf32> to vector<8x32xbf16>
    %cst_10 = arith.constant 0.000000e+00 : f32
    %29 = vector.broadcast %cst_10 : f32 to vector<8x8xf32>
    %30 = vector.extract_strided_slice %24 {offsets = [0, 0], sizes = [8, 8], strides = [1, 1]} : vector<8x32xbf16> to vector<8x8xbf16>
    %31 = vector.extract_strided_slice %26 {offsets = [0, 0], sizes = [8, 8], strides = [1, 1]} : vector<8x32xbf16> to vector<8x8xbf16>
    %32 = vector.extract_strided_slice %28 {offsets = [0, 0], sizes = [8, 8], strides = [1, 1]} : vector<8x32xbf16> to vector<8x8xbf16>
    %cst_11 = arith.constant dense<0.000000e+00> : vector<8x8xf32>
    %33 = tpu.matmul %30, %31, %cst_11 {dimension_numbers = #tpu.dot_dimension_numbers<[1], [1], [0], [0], [0, 0, 1, 0], [], []>} : vector<8x8xbf16>, vector<8x8xbf16>, vector<8x8xf32> -> vector<8x8xf32>
    %cst_12 = arith.constant dense<0xFF800000> : vector<8xf32>
    %34 = vector.multi_reduction <maximumf>, %33, %cst_12 [1] : vector<8x8xf32> to vector<8xf32>
    %35 = vector.shape_cast %34 : vector<8xf32> to vector<8x1xf32>
    %36 = vector.broadcast %35 : vector<8x1xf32> to vector<8x8xf32>
    %37 = arith.subf %33, %36 : vector<8x8xf32>
    %38 = math.exp %37 : vector<8x8xf32>
    %cst_13 = arith.constant dense<0.000000e+00> : vector<8xf32>
    %39 = vector.multi_reduction <add>, %38, %cst_13 [1] : vector<8x8xf32> to vector<8xf32>
    %40 = vector.shape_cast %39 : vector<8xf32> to vector<8x1xf32>
    %41 = tpu.reciprocal %40 {approx = true} : vector<8x1xf32> -> vector<8x1xf32>
    %42 = vector.broadcast %41 : vector<8x1xf32> to vector<8x8xf32>
    %43 = arith.mulf %38, %42 : vector<8x8xf32>
    %44 = arith.addf %29, %43 : vector<8x8xf32>
    %45 = arith.truncf %43 : vector<8x8xf32> to vector<8x8xbf16>
    %cst_14 = arith.constant dense<0.000000e+00> : vector<8x8xf32>
    %46 = tpu.matmul %45, %32, %cst_14 {dimension_numbers = #tpu.dot_dimension_numbers<[1], [0], [0], [1], [0, 0, 1, 1], [], []>} : vector<8x8xbf16>, vector<8x8xbf16>, vector<8x8xf32> -> vector<8x8xf32>
    %47 = vector.extract_strided_slice %24 {offsets = [0, 8], sizes = [8, 8], strides = [1, 1]} : vector<8x32xbf16> to vector<8x8xbf16>
    %48 = vector.extract_strided_slice %26 {offsets = [0, 8], sizes = [8, 8], strides = [1, 1]} : vector<8x32xbf16> to vector<8x8xbf16>
    %49 = vector.extract_strided_slice %28 {offsets = [0, 8], sizes = [8, 8], strides = [1, 1]} : vector<8x32xbf16> to vector<8x8xbf16>
    %cst_15 = arith.constant dense<0.000000e+00> : vector<8x8xf32>
    %50 = tpu.matmul %47, %48, %cst_15 {dimension_numbers = #tpu.dot_dimension_numbers<[1], [1], [0], [0], [0, 0, 1, 0], [], []>} : vector<8x8xbf16>, vector<8x8xbf16>, vector<8x8xf32> -> vector<8x8xf32>
    %cst_16 = arith.constant dense<0xFF800000> : vector<8xf32>
    %51 = vector.multi_reduction <maximumf>, %50, %cst_16 [1] : vector<8x8xf32> to vector<8xf32>
    %52 = vector.shape_cast %51 : vector<8xf32> to vector<8x1xf32>
    %53 = vector.broadcast %52 : vector<8x1xf32> to vector<8x8xf32>
    %54 = arith.subf %50, %53 : vector<8x8xf32>
    %55 = math.exp %54 : vector<8x8xf32>
    %cst_17 = arith.constant dense<0.000000e+00> : vector<8xf32>
    %56 = vector.multi_reduction <add>, %55, %cst_17 [1] : vector<8x8xf32> to vector<8xf32>
    %57 = vector.shape_cast %56 : vector<8xf32> to vector<8x1xf32>
    %58 = tpu.reciprocal %57 {approx = true} : vector<8x1xf32> -> vector<8x1xf32>
    %59 = vector.broadcast %58 : vector<8x1xf32> to vector<8x8xf32>
    %60 = arith.mulf %55, %59 : vector<8x8xf32>
    %61 = arith.addf %44, %60 : vector<8x8xf32>
    %62 = arith.truncf %60 : vector<8x8xf32> to vector<8x8xbf16>
    %cst_18 = arith.constant dense<0.000000e+00> : vector<8x8xf32>
    %63 = tpu.matmul %62, %49, %cst_18 {dimension_numbers = #tpu.dot_dimension_numbers<[1], [0], [0], [1], [0, 0, 1, 1], [], []>} : vector<8x8xbf16>, vector<8x8xbf16>, vector<8x8xf32> -> vector<8x8xf32>
    %64 = vector.extract_strided_slice %24 {offsets = [0, 16], sizes = [8, 8], strides = [1, 1]} : vector<8x32xbf16> to vector<8x8xbf16>
    %65 = vector.extract_strided_slice %26 {offsets = [0, 16], sizes = [8, 8], strides = [1, 1]} : vector<8x32xbf16> to vector<8x8xbf16>
    %66 = vector.extract_strided_slice %28 {offsets = [0, 16], sizes = [8, 8], strides = [1, 1]} : vector<8x32xbf16> to vector<8x8xbf16>
    %cst_19 = arith.constant dense<0.000000e+00> : vector<8x8xf32>
    %67 = tpu.matmul %64, %65, %cst_19 {dimension_numbers = #tpu.dot_dimension_numbers<[1], [1], [0], [0], [0, 0, 1, 0], [], []>} : vector<8x8xbf16>, vector<8x8xbf16>, vector<8x8xf32> -> vector<8x8xf32>
    %cst_20 = arith.constant dense<0xFF800000> : vector<8xf32>
    %68 = vector.multi_reduction <maximumf>, %67, %cst_20 [1] : vector<8x8xf32> to vector<8xf32>
    %69 = vector.shape_cast %68 : vector<8xf32> to vector<8x1xf32>
    %70 = vector.broadcast %69 : vector<8x1xf32> to vector<8x8xf32>
    %71 = arith.subf %67, %70 : vector<8x8xf32>
    %72 = math.exp %71 : vector<8x8xf32>
    %cst_21 = arith.constant dense<0.000000e+00> : vector<8xf32>
    %73 = vector.multi_reduction <add>, %72, %cst_21 [1] : vector<8x8xf32> to vector<8xf32>
    %74 = vector.shape_cast %73 : vector<8xf32> to vector<8x1xf32>
    %75 = tpu.reciprocal %74 {approx = true} : vector<8x1xf32> -> vector<8x1xf32>
    %76 = vector.broadcast %75 : vector<8x1xf32> to vector<8x8xf32>
    %77 = arith.mulf %72, %76 : vector<8x8xf32>
    %78 = arith.addf %61, %77 : vector<8x8xf32>
    %79 = arith.truncf %77 : vector<8x8xf32> to vector<8x8xbf16>
    %cst_22 = arith.constant dense<0.000000e+00> : vector<8x8xf32>
    %80 = tpu.matmul %79, %66, %cst_22 {dimension_numbers = #tpu.dot_dimension_numbers<[1], [0], [0], [1], [0, 0, 1, 1], [], []>} : vector<8x8xbf16>, vector<8x8xbf16>, vector<8x8xf32> -> vector<8x8xf32>
    %81 = vector.extract_strided_slice %24 {offsets = [0, 24], sizes = [8, 8], strides = [1, 1]} : vector<8x32xbf16> to vector<8x8xbf16>
    %82 = vector.extract_strided_slice %26 {offsets = [0, 24], sizes = [8, 8], strides = [1, 1]} : vector<8x32xbf16> to vector<8x8xbf16>
    %83 = vector.extract_strided_slice %28 {offsets = [0, 24], sizes = [8, 8], strides = [1, 1]} : vector<8x32xbf16> to vector<8x8xbf16>
    %cst_23 = arith.constant dense<0.000000e+00> : vector<8x8xf32>
    %84 = tpu.matmul %81, %82, %cst_23 {dimension_numbers = #tpu.dot_dimension_numbers<[1], [1], [0], [0], [0, 0, 1, 0], [], []>} : vector<8x8xbf16>, vector<8x8xbf16>, vector<8x8xf32> -> vector<8x8xf32>
    %cst_24 = arith.constant dense<0xFF800000> : vector<8xf32>
    %85 = vector.multi_reduction <maximumf>, %84, %cst_24 [1] : vector<8x8xf32> to vector<8xf32>
    %86 = vector.shape_cast %85 : vector<8xf32> to vector<8x1xf32>
    %87 = vector.broadcast %86 : vector<8x1xf32> to vector<8x8xf32>
    %88 = arith.subf %84, %87 : vector<8x8xf32>
    %89 = math.exp %88 : vector<8x8xf32>
    %cst_25 = arith.constant dense<0.000000e+00> : vector<8xf32>
    %90 = vector.multi_reduction <add>, %89, %cst_25 [1] : vector<8x8xf32> to vector<8xf32>
    %91 = vector.shape_cast %90 : vector<8xf32> to vector<8x1xf32>
    %92 = tpu.reciprocal %91 {approx = true} : vector<8x1xf32> -> vector<8x1xf32>
    %93 = vector.broadcast %92 : vector<8x1xf32> to vector<8x8xf32>
    %94 = arith.mulf %89, %93 : vector<8x8xf32>
    %95 = arith.addf %78, %94 : vector<8x8xf32>
    %96 = arith.truncf %94 : vector<8x8xf32> to vector<8x8xbf16>
    %cst_26 = arith.constant dense<0.000000e+00> : vector<8x8xf32>
    %97 = tpu.matmul %96, %83, %cst_26 {dimension_numbers = #tpu.dot_dimension_numbers<[1], [0], [0], [1], [0, 0, 1, 1], [], []>} : vector<8x8xbf16>, vector<8x8xbf16>, vector<8x8xf32> -> vector<8x8xf32>
    %98 = tpu.concatenate %46, %63, %80, %97 in 1 : vector<8x8xf32>, vector<8x8xf32>, vector<8x8xf32>, vector<8x8xf32> -> vector<8x32xf32>
    %cst_27 = arith.constant 2.500000e-01 : f32
    %99 = vector.broadcast %cst_27 : f32 to vector<8x8xf32>
    %100 = arith.mulf %95, %99 : vector<8x8xf32>
    %101 = vector.extract_strided_slice %22 {offsets = [8, 0], sizes = [8, 32], strides = [1, 1]} : vector<16x96xf32> to vector<8x32xf32>
    %102 = arith.truncf %101 : vector<8x32xf32> to vector<8x32xbf16>
    %103 = vector.extract_strided_slice %22 {offsets = [8, 32], sizes = [8, 32], strides = [1, 1]} : vector<16x96xf32> to vector<8x32xf32>
    %104 = arith.truncf %103 : vector<8x32xf32> to vector<8x32xbf16>
    %105 = vector.extract_strided_slice %22 {offsets = [8, 64], sizes = [8, 32], strides = [1, 1]} : vector<16x96xf32> to vector<8x32xf32>
    %106 = arith.truncf %105 : vector<8x32xf32> to vector<8x32xbf16>
    %cst_28 = arith.constant 0.000000e+00 : f32
    %107 = vector.broadcast %cst_28 : f32 to vector<8x8xf32>
    %108 = vector.extract_strided_slice %102 {offsets = [0, 0], sizes = [8, 8], strides = [1, 1]} : vector<8x32xbf16> to vector<8x8xbf16>
    %109 = vector.extract_strided_slice %104 {offsets = [0, 0], sizes = [8, 8], strides = [1, 1]} : vector<8x32xbf16> to vector<8x8xbf16>
    %110 = vector.extract_strided_slice %106 {offsets = [0, 0], sizes = [8, 8], strides = [1, 1]} : vector<8x32xbf16> to vector<8x8xbf16>
    %cst_29 = arith.constant dense<0.000000e+00> : vector<8x8xf32>
    %111 = tpu.matmul %108, %109, %cst_29 {dimension_numbers = #tpu.dot_dimension_numbers<[1], [1], [0], [0], [0, 0, 1, 0], [], []>} : vector<8x8xbf16>, vector<8x8xbf16>, vector<8x8xf32> -> vector<8x8xf32>
    %cst_30 = arith.constant dense<0xFF800000> : vector<8xf32>
    %112 = vector.multi_reduction <maximumf>, %111, %cst_30 [1] : vector<8x8xf32> to vector<8xf32>
    %113 = vector.shape_cast %112 : vector<8xf32> to vector<8x1xf32>
    %114 = vector.broadcast %113 : vector<8x1xf32> to vector<8x8xf32>
    %115 = arith.subf %111, %114 : vector<8x8xf32>
    %116 = math.exp %115 : vector<8x8xf32>
    %cst_31 = arith.constant dense<0.000000e+00> : vector<8xf32>
    %117 = vector.multi_reduction <add>, %116, %cst_31 [1] : vector<8x8xf32> to vector<8xf32>
    %118 = vector.shape_cast %117 : vector<8xf32> to vector<8x1xf32>
    %119 = tpu.reciprocal %118 {approx = true} : vector<8x1xf32> -> vector<8x1xf32>
    %120 = vector.broadcast %119 : vector<8x1xf32> to vector<8x8xf32>
    %121 = arith.mulf %116, %120 : vector<8x8xf32>
    %122 = arith.addf %107, %121 : vector<8x8xf32>
    %123 = arith.truncf %121 : vector<8x8xf32> to vector<8x8xbf16>
    %cst_32 = arith.constant dense<0.000000e+00> : vector<8x8xf32>
    %124 = tpu.matmul %123, %110, %cst_32 {dimension_numbers = #tpu.dot_dimension_numbers<[1], [0], [0], [1], [0, 0, 1, 1], [], []>} : vector<8x8xbf16>, vector<8x8xbf16>, vector<8x8xf32> -> vector<8x8xf32>
    %125 = vector.extract_strided_slice %102 {offsets = [0, 8], sizes = [8, 8], strides = [1, 1]} : vector<8x32xbf16> to vector<8x8xbf16>
    %126 = vector.extract_strided_slice %104 {offsets = [0, 8], sizes = [8, 8], strides = [1, 1]} : vector<8x32xbf16> to vector<8x8xbf16>
    %127 = vector.extract_strided_slice %106 {offsets = [0, 8], sizes = [8, 8], strides = [1, 1]} : vector<8x32xbf16> to vector<8x8xbf16>
    %cst_33 = arith.constant dense<0.000000e+00> : vector<8x8xf32>
    %128 = tpu.matmul %125, %126, %cst_33 {dimension_numbers = #tpu.dot_dimension_numbers<[1], [1], [0], [0], [0, 0, 1, 0], [], []>} : vector<8x8xbf16>, vector<8x8xbf16>, vector<8x8xf32> -> vector<8x8xf32>
    %cst_34 = arith.constant dense<0xFF800000> : vector<8xf32>
    %129 = vector.multi_reduction <maximumf>, %128, %cst_34 [1] : vector<8x8xf32> to vector<8xf32>
    %130 = vector.shape_cast %129 : vector<8xf32> to vector<8x1xf32>
    %131 = vector.broadcast %130 : vector<8x1xf32> to vector<8x8xf32>
    %132 = arith.subf %128, %131 : vector<8x8xf32>
    %133 = math.exp %132 : vector<8x8xf32>
    %cst_35 = arith.constant dense<0.000000e+00> : vector<8xf32>
    %134 = vector.multi_reduction <add>, %133, %cst_35 [1] : vector<8x8xf32> to vector<8xf32>
    %135 = vector.shape_cast %134 : vector<8xf32> to vector<8x1xf32>
    %136 = tpu.reciprocal %135 {approx = true} : vector<8x1xf32> -> vector<8x1xf32>
    %137 = vector.broadcast %136 : vector<8x1xf32> to vector<8x8xf32>
    %138 = arith.mulf %133, %137 : vector<8x8xf32>
    %139 = arith.addf %122, %138 : vector<8x8xf32>
    %140 = arith.truncf %138 : vector<8x8xf32> to vector<8x8xbf16>
    %cst_36 = arith.constant dense<0.000000e+00> : vector<8x8xf32>
    %141 = tpu.matmul %140, %127, %cst_36 {dimension_numbers = #tpu.dot_dimension_numbers<[1], [0], [0], [1], [0, 0, 1, 1], [], []>} : vector<8x8xbf16>, vector<8x8xbf16>, vector<8x8xf32> -> vector<8x8xf32>
    %142 = vector.extract_strided_slice %102 {offsets = [0, 16], sizes = [8, 8], strides = [1, 1]} : vector<8x32xbf16> to vector<8x8xbf16>
    %143 = vector.extract_strided_slice %104 {offsets = [0, 16], sizes = [8, 8], strides = [1, 1]} : vector<8x32xbf16> to vector<8x8xbf16>
    %144 = vector.extract_strided_slice %106 {offsets = [0, 16], sizes = [8, 8], strides = [1, 1]} : vector<8x32xbf16> to vector<8x8xbf16>
    %cst_37 = arith.constant dense<0.000000e+00> : vector<8x8xf32>
    %145 = tpu.matmul %142, %143, %cst_37 {dimension_numbers = #tpu.dot_dimension_numbers<[1], [1], [0], [0], [0, 0, 1, 0], [], []>} : vector<8x8xbf16>, vector<8x8xbf16>, vector<8x8xf32> -> vector<8x8xf32>
    %cst_38 = arith.constant dense<0xFF800000> : vector<8xf32>
    %146 = vector.multi_reduction <maximumf>, %145, %cst_38 [1] : vector<8x8xf32> to vector<8xf32>
    %147 = vector.shape_cast %146 : vector<8xf32> to vector<8x1xf32>
    %148 = vector.broadcast %147 : vector<8x1xf32> to vector<8x8xf32>
    %149 = arith.subf %145, %148 : vector<8x8xf32>
    %150 = math.exp %149 : vector<8x8xf32>
    %cst_39 = arith.constant dense<0.000000e+00> : vector<8xf32>
    %151 = vector.multi_reduction <add>, %150, %cst_39 [1] : vector<8x8xf32> to vector<8xf32>
    %152 = vector.shape_cast %151 : vector<8xf32> to vector<8x1xf32>
    %153 = tpu.reciprocal %152 {approx = true} : vector<8x1xf32> -> vector<8x1xf32>
    %154 = vector.broadcast %153 : vector<8x1xf32> to vector<8x8xf32>
    %155 = arith.mulf %150, %154 : vector<8x8xf32>
    %156 = arith.addf %139, %155 : vector<8x8xf32>
    %157 = arith.truncf %155 : vector<8x8xf32> to vector<8x8xbf16>
    %cst_40 = arith.constant dense<0.000000e+00> : vector<8x8xf32>
    %158 = tpu.matmul %157, %144, %cst_40 {dimension_numbers = #tpu.dot_dimension_numbers<[1], [0], [0], [1], [0, 0, 1, 1], [], []>} : vector<8x8xbf16>, vector<8x8xbf16>, vector<8x8xf32> -> vector<8x8xf32>
    %159 = vector.extract_strided_slice %102 {offsets = [0, 24], sizes = [8, 8], strides = [1, 1]} : vector<8x32xbf16> to vector<8x8xbf16>
    %160 = vector.extract_strided_slice %104 {offsets = [0, 24], sizes = [8, 8], strides = [1, 1]} : vector<8x32xbf16> to vector<8x8xbf16>
    %161 = vector.extract_strided_slice %106 {offsets = [0, 24], sizes = [8, 8], strides = [1, 1]} : vector<8x32xbf16> to vector<8x8xbf16>
    %cst_41 = arith.constant dense<0.000000e+00> : vector<8x8xf32>
    %162 = tpu.matmul %159, %160, %cst_41 {dimension_numbers = #tpu.dot_dimension_numbers<[1], [1], [0], [0], [0, 0, 1, 0], [], []>} : vector<8x8xbf16>, vector<8x8xbf16>, vector<8x8xf32> -> vector<8x8xf32>
    %cst_42 = arith.constant dense<0xFF800000> : vector<8xf32>
    %163 = vector.multi_reduction <maximumf>, %162, %cst_42 [1] : vector<8x8xf32> to vector<8xf32>
    %164 = vector.shape_cast %163 : vector<8xf32> to vector<8x1xf32>
    %165 = vector.broadcast %164 : vector<8x1xf32> to vector<8x8xf32>
    %166 = arith.subf %162, %165 : vector<8x8xf32>
    %167 = math.exp %166 : vector<8x8xf32>
    %cst_43 = arith.constant dense<0.000000e+00> : vector<8xf32>
    %168 = vector.multi_reduction <add>, %167, %cst_43 [1] : vector<8x8xf32> to vector<8xf32>
    %169 = vector.shape_cast %168 : vector<8xf32> to vector<8x1xf32>
    %170 = tpu.reciprocal %169 {approx = true} : vector<8x1xf32> -> vector<8x1xf32>
    %171 = vector.broadcast %170 : vector<8x1xf32> to vector<8x8xf32>
    %172 = arith.mulf %167, %171 : vector<8x8xf32>
    %173 = arith.addf %156, %172 : vector<8x8xf32>
    %174 = arith.truncf %172 : vector<8x8xf32> to vector<8x8xbf16>
    %cst_44 = arith.constant dense<0.000000e+00> : vector<8x8xf32>
    %175 = tpu.matmul %174, %161, %cst_44 {dimension_numbers = #tpu.dot_dimension_numbers<[1], [0], [0], [1], [0, 0, 1, 1], [], []>} : vector<8x8xbf16>, vector<8x8xbf16>, vector<8x8xf32> -> vector<8x8xf32>
    %176 = tpu.concatenate %124, %141, %158, %175 in 1 : vector<8x8xf32>, vector<8x8xf32>, vector<8x8xf32>, vector<8x8xf32> -> vector<8x32xf32>
    %cst_45 = arith.constant 2.500000e-01 : f32
    %177 = vector.broadcast %cst_45 : f32 to vector<8x8xf32>
    %178 = arith.mulf %173, %177 : vector<8x8xf32>
    %179 = tpu.concatenate %98, %176 in 0 : vector<8x32xf32>, vector<8x32xf32> -> vector<16x32xf32>
    %180 = tpu.concatenate %100, %178 in 0 : vector<8x8xf32>, vector<8x8xf32> -> vector<16x8xf32>
    %c0_46 = arith.constant 0 : index
    %c0_47 = arith.constant 0 : index
    %181 = vector.load %arg10[%c0_46, %c0_47] : memref<16x8xf32, #tpu.memory_space<vmem>>, vector<16x8xf32>
    tpu.vector_store %arg10[%c0_46, %c0_47], %180 {strides = array<i32>} : memref<16x8xf32, #tpu.memory_space<vmem>>, vector<16x8xf32>,
    %182 = arith.truncf %179 : vector<16x32xf32> to vector<16x32xbf16>
    %c0_48 = arith.constant 0 : index
    %c0_49 = arith.constant 0 : index
    %183 = vector.load %arg3[%c0_48, %c0_49] : memref<32x32xbf16, #tpu.memory_space<vmem>>, vector<32x32xbf16>
    %cst_50 = arith.constant dense<0.000000e+00> : vector<16x32xf32>
    %184 = tpu.matmul %182, %183, %cst_50 {dimension_numbers = #tpu.dot_dimension_numbers<[1], [0], [0], [1], [0, 0, 1, 1], [], []>} : vector<16x32xbf16>, vector<32x32xbf16>, vector<16x32xf32> -> vector<16x32xf32>
    %c0_51 = arith.constant 0 : index
    %c0_52 = arith.constant 0 : index
    %185 = vector.load %arg4[%c0_51, %c0_52] : memref<1x32xf32, #tpu.memory_space<vmem>>, vector<1x32xf32>
    %186 = vector.broadcast %185 : vector<1x32xf32> to vector<16x32xf32>
    %187 = arith.addf %184, %186 : vector<16x32xf32>
    %188 = arith.addf %0, %187 : vector<16x32xf32>
    %cst_53 = arith.constant dense<0.000000e+00> : vector<16xf32>
    %189 = vector.multi_reduction <add>, %188, %cst_53 [1] : vector<16x32xf32> to vector<16xf32>
    %190 = vector.shape_cast %189 : vector<16xf32> to vector<16x1xf32>
    %cst_54 = arith.constant 3.200000e+01 : f32
    %191 = vector.broadcast %cst_54 : f32 to vector<16x1xf32>
    %192 = arith.divf %190, %191 : vector<16x1xf32>
    %193 = vector.broadcast %192 : vector<16x1xf32> to vector<16x32xf32>
    %194 = arith.subf %188, %193 : vector<16x32xf32>
    %195 = arith.mulf %194, %194 : vector<16x32xf32>
    %cst_55 = arith.constant dense<0.000000e+00> : vector<16xf32>
    %196 = vector.multi_reduction <add>, %195, %cst_55 [1] : vector<16x32xf32> to vector<16xf32>
    %197 = vector.shape_cast %196 : vector<16xf32> to vector<16x1xf32>
    %cst_56 = arith.constant 3.200000e+01 : f32
    %198 = vector.broadcast %cst_56 : f32 to vector<16x1xf32>
    %199 = arith.divf %197, %198 : vector<16x1xf32>
    %cst_57 = arith.constant 9.99999974E-6 : f32
    %200 = vector.broadcast %cst_57 : f32 to vector<16x1xf32>
    %201 = arith.addf %199, %200 : vector<16x1xf32>
    %202 = math.rsqrt %201 : vector<16x1xf32>
    %203 = vector.broadcast %202 : vector<16x1xf32> to vector<16x32xf32>
    %204 = arith.mulf %194, %203 : vector<16x32xf32>
    %205 = arith.truncf %204 : vector<16x32xf32> to vector<16x32xbf16>
    %c0_58 = arith.constant 0 : index
    %c0_59 = arith.constant 0 : index
    %206 = vector.load %arg5[%c0_58, %c0_59] : memref<32x32xbf16, #tpu.memory_space<vmem>>, vector<32x32xbf16>
    %cst_60 = arith.constant dense<0.000000e+00> : vector<16x32xf32>
    %207 = tpu.matmul %205, %206, %cst_60 {dimension_numbers = #tpu.dot_dimension_numbers<[1], [0], [0], [1], [0, 0, 1, 1], [], []>} : vector<16x32xbf16>, vector<32x32xbf16>, vector<16x32xf32> -> vector<16x32xf32>
    %c0_61 = arith.constant 0 : index
    %c0_62 = arith.constant 0 : index
    %208 = vector.load %arg6[%c0_61, %c0_62] : memref<1x32xf32, #tpu.memory_space<vmem>>, vector<1x32xf32>
    %209 = vector.broadcast %208 : vector<1x32xf32> to vector<16x32xf32>
    %210 = arith.addf %207, %209 : vector<16x32xf32>
    %cst_63 = arith.constant 0.000000e+00 : f32
    %211 = vector.broadcast %cst_63 : f32 to vector<16x32xf32>
    %212 = arith.cmpf ogt, %210, %211 : vector<16x32xf32>
    %213 = math.exp %210 : vector<16x32xf32>
    %cst_64 = arith.constant 1.000000e+00 : f32
    %214 = vector.broadcast %cst_64 : f32 to vector<16x32xf32>
    %215 = arith.subf %213, %214 : vector<16x32xf32>
    %cst_65 = arith.constant 1.67326319 : f32
    %216 = vector.broadcast %cst_65 : f32 to vector<16x32xf32>
    %217 = arith.mulf %216, %215 : vector<16x32xf32>
    %218 = arith.select %212, %210, %217 : vector<16x32xi1>, vector<16x32xf32>
    %cst_66 = arith.constant 1.05070102 : f32
    %219 = vector.broadcast %cst_66 : f32 to vector<16x32xf32>
    %220 = arith.mulf %219, %218 : vector<16x32xf32>
    %221 = arith.truncf %220 : vector<16x32xf32> to vector<16x32xbf16>
    %c0_67 = arith.constant 0 : index
    %c0_68 = arith.constant 0 : index
    %222 = vector.load %arg7[%c0_67, %c0_68] : memref<32x32xbf16, #tpu.memory_space<vmem>>, vector<32x32xbf16>
    %cst_69 = arith.constant dense<0.000000e+00> : vector<16x32xf32>
    %223 = tpu.matmul %221, %222, %cst_69 {dimension_numbers = #tpu.dot_dimension_numbers<[1], [0], [0], [1], [0, 0, 1, 1], [], []>} : vector<16x32xbf16>, vector<32x32xbf16>, vector<16x32xf32> -> vector<16x32xf32>
    %c0_70 = arith.constant 0 : index
    %c0_71 = arith.constant 0 : index
    %224 = vector.load %arg8[%c0_70, %c0_71] : memref<1x32xf32, #tpu.memory_space<vmem>>, vector<1x32xf32>
    %225 = vector.broadcast %224 : vector<1x32xf32> to vector<16x32xf32>
    %226 = arith.addf %223, %225 : vector<16x32xf32>
    %227 = arith.addf %188, %226 : vector<16x32xf32>
    %c0_72 = arith.constant 0 : index
    %c0_73 = arith.constant 0 : index
    %228 = vector.load %arg9[%c0_72, %c0_73] : memref<16x32xf32, #tpu.memory_space<vmem>>, vector<16x32xf32>
    tpu.vector_store %arg9[%c0_72, %c0_73], %227 {strides = array<i32>} : memref<16x32xf32, #tpu.memory_space<vmem>>, vector<16x32xf32>,
    return
  }
}

</mosaic_0001>

<bundles_post_ra>
// kernel: tpu_custom_call.1
= control target key start
LH: loop header
LB: loop body
LE: loop exit
PB: predicated region body
PF: predicated region fallthrough
CT: control target
= control target key end

     0   :  { %16 = vsyncpa [#allocation3], 0  ;;  %s2210_s0 = inlined_call_operand.hbm [shape: f32[16,32], index: 0, kind: input, shape index: {}]   ;;  %s2211_s1 = inlined_call_operand.hbm [shape: bf16[32,96], index: 1, kind: input, shape index: {}]   ;;  %s2212_s2 = inlined_call_operand.vmem [shape: f32[1,96], index: 2, kind: input, shape index: {}]   ;;  %s2213_s3 = inlined_call_operand.hbm [shape: bf16[32,32], index: 3, kind: input, shape index: {}]   ;;  %s2214_s4 = inlined_call_operand.vmem [shape: f32[1,32], index: 4, kind: input, shape index: {}]   ;;  %s2215_s5 = inlined_call_operand.vmem [shape: bf16[32,32], index: 5, kind: input, shape index: {}]   ;;  %s2216_s6 = inlined_call_operand.vmem [shape: f32[1,32], index: 6, kind: input, shape index: {}]   ;;  %s2217_s7 = inlined_call_operand.hbm [shape: bf16[32,32], index: 7, kind: input, shape index: {}]   ;;  %s2218_s8 = inlined_call_operand.vmem [shape: f32[1,32], index: 8, kind: input, shape index: {}]   ;;  %s2219_s9 = inlined_call_operand.hbm [shape: f32[16,32], index: 9, kind: output, shape index: {0}]   ;;  %s2220_s10 = inlined_call_operand.vmem [shape: f32[16,8], index: 10, kind: output, shape index: {1}]  }
   0x1   :  { %17 = vsyncpa [#allocation6], 0 }
   0x2   :  { %18 = vsyncpa [#allocation9], 0 }
   0x3   :  { %19 = vsyncpa [#allocation4], 0  ;;  %s1802_s13 = smov [#allocation5]   ;;  %s1684_s17 = scalar_lea.hbm %s2211_s1, 256 }
   0x4   :  { %s37_s14 = sshll.u32 %s1802_s13, 4  ;;  %p1685_p0 = scmp.ne.s32.totalorder %s2211_s1, %s1684_s17  ;;  %s38_s14 = int_to_ptr.vmem [resolvable:$true] %s37_s14 }
   0x5   :  { %p1688_p1 = scmp.lt.u32.totalorder %s1684_s17, %s2211_s1 }
   0x7   :  { %p1690_p2 = pnand %p1688_p1, %p1685_p0 }
   0x9   :  { %1693 = shalt.err (!%p1690_p2)
}
   0xa   :  { %s1694_s22 = scalar_lea.vmem %s38_s14, 256  ;;  %p1699_p4 = scmp.lt.s32.totalorder %s38_s14, %s38_s14 }
   0xb   :  { %p1695_p3 = scmp.ne.s32.totalorder %s38_s14, %s1694_s22  ;;  %p1700_p5 = scmp.lt.s32.totalorder %s1694_s22, %s1694_s22 }
   0xd   :  { %p1701_p6 = por %p1700_p5, %p1699_p4 }
   0xf   :  { %p1702_p7 = pnand %p1701_p6, %p1695_p3 }
  0x11   :  { %1705 = shalt.err (!%p1702_p7)
}
  0x12   :  { %s1803_s23 = smov 64   ;;  %s1804_s24 = smov 4  }
  0x13   :  { %43 = dma.hbm_to_vmem [thread:$0]  %s2211_s1, 256, %s38_s14, [#allocation6], %s1803_s23, %s1803_s23, %s1804_s24  }
  0x14   :  { %s1805_s27 = smov [#allocation2]   ;;  %s1706_s11 = scalar_lea.hbm %s2210_s0, 256 }
  0x15   :  { %s25_s28 = sshll.u32 %s1805_s27, 4  ;;  %p1707_p8 = scmp.ne.s32.totalorder %s2210_s0, %s1706_s11  ;;  %s26_s28 = int_to_ptr.vmem [resolvable:$true] %s25_s28 }
  0x16   :  { %p1710_p9 = scmp.lt.u32.totalorder %s1706_s11, %s2210_s0 }
  0x18   :  { %p1712_p10 = pnand %p1710_p9, %p1707_p8 }
  0x1a   :  { %1715 = shalt.err (!%p1712_p10)
}
  0x1b   :  { %s1716_s17 = scalar_lea.vmem %s26_s28, 256  ;;  %p1721_p12 = scmp.lt.s32.totalorder %s26_s28, %s26_s28 }
  0x1c   :  { %p1717_p11 = scmp.ne.s32.totalorder %s26_s28, %s1716_s17  ;;  %p1722_p13 = scmp.lt.s32.totalorder %s1716_s17, %s1716_s17 }
  0x1e   :  { %p1723_p0 = por %p1722_p13, %p1721_p12 }
  0x20   :  { %p1724_p1 = pnand %p1723_p0, %p1717_p11 }
  0x22   :  { %1727 = shalt.err (!%p1724_p1)
}
  0x23   :  { %s1806_s1 = smov 128   ;;  %s1807_s14 = smov 8  }
  0x24   :  { %31 = dma.hbm_to_vmem [thread:$0]  %s2210_s0, 256, %s26_s28, [#allocation3], %s1806_s1, %s1806_s1, %s1807_s14  }
  0x25   :  { %s1808_s20 = smov [#allocation7]   ;;  %s1809_s22 = smov [#allocation8]  }
  0x26   :  { %s51_s21 = sshll.u32 %s1808_s20, 4  ;;  %s69_s25 = sshll.u32 %s1809_s22, 4  ;;  %s52_s21 = int_to_ptr.vmem [resolvable:$true] %s51_s21  ;;  %s1910_s25 = int_to_ptr.vmem [resolvable:$true] %s69_s25 }
  0x27   :  { %s1728_s29 = scalar_lea.hbm %s2213_s3, 256 }
  0x28   :  { %p1729_p2 = scmp.ne.s32.totalorder %s2213_s3, %s1728_s29  ;;  %p1732_p3 = scmp.lt.u32.totalorder %s1728_s29, %s2213_s3 }
  0x2a   :  { %p1734_p4 = pnand %p1732_p3, %p1729_p2 }
  0x2c   :  { %1737 = shalt.err (!%p1734_p4)
}
  0x2d   :  { %s1738_s0 = scalar_lea.vmem %s52_s21, 256  ;;  %p1743_p6 = scmp.lt.s32.totalorder %s52_s21, %s52_s21 }
  0x2e   :  { %p1739_p5 = scmp.ne.s32.totalorder %s52_s21, %s1738_s0  ;;  %p1744_p7 = scmp.lt.s32.totalorder %s1738_s0, %s1738_s0 }
  0x30   :  { %p1745_p8 = por %p1744_p7, %p1743_p6 }
  0x32   :  { %p1746_p9 = pnand %p1745_p8, %p1739_p5 }
  0x34   :  { %1749 = shalt.err (!%p1746_p9)
}
  0x35   :  { %57 = dma.hbm_to_vmem [thread:$0]  %s2213_s3, 256, %s52_s21, [#allocation6], %s1803_s23, %s1803_s23, %s1804_s24  }
  0x36   :  { %s1750_s18 = scalar_lea.hbm %s2217_s7, 256 }
  0x37   :  { %p1751_p10 = scmp.ne.s32.totalorder %s2217_s7, %s1750_s18  ;;  %p1754_p11 = scmp.lt.u32.totalorder %s1750_s18, %s2217_s7 }
  0x39   :  { %p1756_p12 = pnand %p1754_p11, %p1751_p10 }
  0x3b   :  { %1759 = shalt.err (!%p1756_p12)
}
  0x3c   :  { %s1760_s27 = scalar_lea.vmem %s1910_s25, 256  ;;  %p1765_p0 = scmp.lt.s32.totalorder %s1910_s25, %s1910_s25 }
  0x3d   :  { %p1761_p13 = scmp.ne.s32.totalorder %s1910_s25, %s1760_s27  ;;  %p1766_p1 = scmp.lt.s32.totalorder %s1760_s27, %s1760_s27 }
  0x3f   :  { %p1767_p2 = por %p1766_p1, %p1765_p0 }
  0x41   :  { %p1768_p3 = pnand %p1767_p2, %p1761_p13 }
  0x43   :  { %1771 = shalt.err (!%p1768_p3)
}
  0x44   :  { %75 = dma.hbm_to_vmem [thread:$0]  %s2217_s7, 256, %s1910_s25, [#allocation9], %s1803_s23, %s1803_s23, %s1804_s24  }
  0x45   :  { %1794 = dma.done.wait [#allocation3], 256  }
  0x46   :  { %1795 = vsyncadd [#allocation3], 4294967040 }
  0x47   :  { %1796 = dma.done.wait [#allocation6], 512  }
  0x48   :  { %1797 = vsyncadd [#allocation6], 4294966784 }
  0x49   :  { %1798 = dma.done.wait [#allocation9], 256  }
  0x4a   :  { %1799 = vsyncadd [#allocation9], 4294967040  ;;  %vm93_vm0 = vcmask 261120   ;;  %v1947_v0 = vld [vmem:[#allocation2] sm:$0xff]  ;;  %v1949_v1 = vld [vmem:[#allocation2 + $0x8] sm:$0xff]  ;;  %v1810_v15 = vmov 0.0  }
  0x4b   :  { %v94_v2 = vsel %vm93_vm0, %v1947_v0, 0.0  ;;  %v97_v3 = vsel %vm93_vm0, %v1949_v1, 0.0  ;;  %v1632_v14 = vld [vmem:[#allocation5] sm:$0xff]   ;;  %1466 = vmatprep.subr.bf16.mxu0 %v1810_v15  ;;  %vm1811_vm1 = vmmov 0   ;;  %v1633_v16 = vld [vmem:[#allocation5 + $0x8] sm:$0xff]   ;;  %1474 = vmatprep.subr.bf16.mxu1 %v1810_v15  ;;  %s1812_s25 = smov 88  }
  0x4c   :  { %95 = vadd.xlane.f32.xlu0 %v94_v2  ;;  %1470 = vmatprep.mubr.msk.bf16.mxu0 %vm1811_vm1, %v1810_v15  ;;  %v1388_v28 = vld [vmem:[%s2212_s2] ss:$0 sm:$0xff]  ;;  %s1813_s29 = smov 96   ;;  %s1814_s30 = smov 120   ;;  %vm193_vm2 = vcmask 64512   ;;  %vm258_vm3 = vcmask 1043456  }
  0x4d   :  { %1467 = vmatpush3.bf16.msra.mxu0 %v1632_v14  ;;  %1476 = vmatprep.mubr.msk.bf16.mxu1 %vm1811_vm1, %v1810_v15  ;;  %s1815_s11 = smov 112   ;;  %s1816_s2 = smov 80   ;;  %vm648_vm4 = vcmask 130048   ;;  %vm650_vm5 = vcmask 195584  }
  0x4e   :  { %1468 = vmatprep.subr.bf16.mxu0 %v1810_v15  ;;  %s1817_s12 = smov 104   ;;  %s1818_s13 = smov 72  }
  0x4f   :  { %s1819_s0 = smov 56   ;;  %s1820_s28 = smov 48  }
  0x50   :  { %98 = vadd.xlane.f32.xlu0 %v97_v3  ;;  %s1823_s19 = smov 24   ;;  %s1824_s24 = smov [#allocation10]  }
  0x51   :  { %1469 = vmatpush3.bf16.msra.mxu0 %v1633_v16 }
  0x52   :  { %1480 = vmatprep.subr.bf16.mxu0 %v1810_v15 }
  0xd9   :  { %v96_v4 = vpop.xlane.xlu0 %95 }
  0xda   :  { %v101_v5 = vmul.f32 0.03125, %v96_v4 }
  0xdc   :  { %v103_v6 = vsub.f32 %v1947_v0, %v101_v5 }
  0xdd   :  { %v99_v7 = vpop.xlane.xlu0 %98 }
  0xde   :  { %v102_v8 = vmul.f32 0.03125, %v99_v7  ;;  %v105_v9 = vmul.f32 %v103_v6, %v103_v6 }
  0xe0   :  { %v104_v10 = vsub.f32 %v1949_v1, %v102_v8  ;;  %v107_v11 = vsel %vm93_vm0, %v105_v9, 0.0 }
  0xe1   :  { %108 = vadd.xlane.f32.xlu1 %v107_v11 }
  0xe2   :  { %v106_v12 = vmul.f32 %v104_v10, %v104_v10 }
  0xe4   :  { %v110_v13 = vsel %vm93_vm0, %v106_v12, 0.0 }
  0xe5   :  { %111 = vadd.xlane.f32.xlu1 %v110_v13 }
 0x16e   :  { %v109_v17 = vpop.xlane.xlu1 %108 }
 0x16f   :  { %v113_v18 = vmul.f32 0.03125, %v109_v17 }
 0x171   :  { %v115_v19 = vadd.f32 1e-05, %v113_v18 }
 0x172   :  { %v112_v20 = vpop.xlane.xlu1 %111 }
 0x173   :  { %v114_v21 = vmul.f32 0.03125, %v112_v20  ;;  %1640 = vrsqrt.f32 %v115_v19 }
 0x175   :  { %v116_v22 = vadd.f32 1e-05, %v114_v21 }
 0x177   :  { %1642 = vrsqrt.f32 %v116_v22 }
 0x17d   :  { %v1641_v23 = vpop.eup %1640 }
 0x17e   :  { %v119_v25 = vmul.f32 %v1641_v23, %v103_v6 }
 0x181   :  { %v1643_v24 = vpop.eup %1642 }
 0x182   :  { %v120_v26 = vmul.f32 %v1643_v24, %v104_v10 }
 0x184   :  { %v121_v27 = vpack.c.bf16 %v120_v26, %v119_v25 }
 0x186   :  { %1471 = vmatmul.mubr.msk.bf16.vlgmr.msra.gmra.mrb[0].mxu0 %vm93_vm0, %v121_v27 }
 0x187   :  { %1482 = vmatprep.mubr.msk.bf16.mxu0 %vm1811_vm1, %v1810_v15 }
 0x259   :  { %v182_v29 = vpop.f32.mrb[0].mxu0 }
 0x25a   :  { %v183_v30 = vadd.f32 %v1388_v28, %v182_v29  ;;  %v1472_v31 = vpop.f32.mrb[1].mxu0 }
 0x25b   :  { %v185_v32 = vpop.f32.mrb[2].mxu0 }
 0x25c   :  { %v1973_v33 = vpack.c.bf16 %v183_v30, %v183_v30  ;;  %v1473_v34 = vpop.f32.mrb[3].mxu0  ;;  %v186_v35 = vadd.f32 %v1388_v28, %v185_v32 }
 0x25e   :  { %304 = vrot.lane.b32.xlu1 %v1973_v33, %s1812_s25  ;;  %191 = vrot.lane.b32.xlu0 %v1973_v33, %s1813_s29  ;;  %v1981_v36 = vpack.c.bf16 %v186_v35, %v186_v35 }
 0x262   :  { %302 = vrot.lane.b32.xlu1 %v1973_v33, %s1814_s30  ;;  %413 = vrot.lane.b32.xlu0 %v1973_v33, %s1815_s11 }
 0x266   :  { %415 = vrot.lane.b32.xlu1 %v1973_v33, %s1816_s2  ;;  %524 = vrot.lane.b32.xlu0 %v1973_v33, %s1817_s12 }
 0x26a   :  { %526 = vrot.lane.b32.xlu1 %v1973_v33, %s1818_s13  ;;  %766 = vrot.lane.b32.xlu0 %v1981_v36, %s1812_s25  ;;  %s1370_s25 = sshll.u32 %s1824_s24, 4  ;;  %s1371_s25 = int_to_ptr.vmem [resolvable:$true] %s1370_s25 }
 0x26b   :  { %p1777_p5 = scmp.lt.s32.totalorder %s1371_s25, %s1371_s25 }
 0x26e   :  { %877 = vrot.lane.b32.xlu0 %v1981_v36, %s1816_s2  ;;  %655 = vrot.lane.b32.xlu1 %v1981_v36, %s1813_s29  ;;  %s1772_s29 = scalar_lea.vmem %s1371_s25, 256 }
 0x26f   :  { %p1773_p4 = scmp.ne.s32.totalorder %s1371_s25, %s1772_s29  ;;  %p1778_p6 = scmp.lt.s32.totalorder %s1772_s29, %s1772_s29 }
 0x271   :  { %p1779_p7 = por %p1778_p6, %p1777_p5 }
 0x272   :  { %988 = vrot.lane.b32.xlu0 %v1981_v36, %s1818_s13  ;;  %764 = vrot.lane.b32.xlu1 %v1981_v36, %s1814_s30 }
 0x273   :  { %p1780_p8 = pnand %p1779_p7, %p1773_p4 }
 0x276   :  { %875 = vrot.lane.b32.xlu1 %v1981_v36, %s1815_s11 }
 0x27a   :  { %986 = vrot.lane.b32.xlu1 %v1981_v36, %s1817_s12 }
 0x27e   :  { %365 = vrot.lane.b32.xlu1 %v1973_v33, %s1819_s0 }
 0x2d0   :  { %v192_v37 = vpop.permute.xlu0 %191  ;;  %v305_v39 = vpop.permute.xlu1 %304 }
 0x2d1   :  { %v198_v38 = vsel %vm193_vm2, %v192_v37, 0  ;;  %v310_v41 = vsel %vm193_vm2, %v305_v39, 0 }
 0x2d2   :  { %1475 = vmatpush3.bf16.xpose.msra.mxu1 %v198_v38 }
 0x2d3   :  { %1486 = vmatprep.subr.bf16.mxu1 %v1810_v15 }
 0x2d4   :  { %v303_v40 = vpop.permute.xlu1 %302  ;;  %v414_v45 = vpop.permute.xlu0 %413 }
 0x2d8   :  { %v416_v42 = vpop.permute.xlu1 %415  ;;  %v525_v48 = vpop.permute.xlu0 %524 }
 0x2d9   :  { %1477 = vmatmul.mubr.msk.bf16.vlgmr.msra.gmra.mrb[0].mxu1 %vm193_vm2, %v1973_v33  ;;  %v421_v43 = vsel %vm193_vm2, %v416_v42, 0 }
 0x2da   :  { %1487 = vmatpush3.bf16.xpose.msra.mxu1 %v310_v41  ;;  %1488 = vmatprep.mubr.msk.bf16.mxu1 %vm1811_vm1, %v1810_v15 }
 0x2db   :  { %1498 = vmatprep.subr.bf16.mxu1 %v1810_v15 }
 0x2dc   :  { %v527_v44 = vpop.permute.xlu1 %526  ;;  %v767_v50 = vpop.permute.xlu0 %766 }
 0x2dd   :  { %v532_v46 = vsel %vm193_vm2, %v527_v44, 0  ;;  %v772_v51 = vsel %vm193_vm2, %v767_v50, 0 }
 0x2e0   :  { %v656_v47 = vpop.permute.xlu1 %655  ;;  %v878_v52 = vpop.permute.xlu0 %877 }
 0x2e1   :  { %1489 = vmatmul.mubr.msk.bf16.vlgmr.msra.gmra.mrb[4].mxu1 %vm193_vm2, %v303_v40  ;;  %v661_v49 = vsel %vm193_vm2, %v656_v47, 0  ;;  %v883_v54 = vsel %vm193_vm2, %v878_v52, 0 }
 0x2e2   :  { %1499 = vmatpush3.bf16.xpose.msra.mxu1 %v421_v43  ;;  %1500 = vmatprep.mubr.msk.bf16.mxu1 %vm1811_vm1, %v1810_v15 }
 0x2e3   :  { %1510 = vmatprep.subr.bf16.mxu1 %v1810_v15 }
 0x2e4   :  { %v765_v53 = vpop.permute.xlu1 %764  ;;  %v989_v55 = vpop.permute.xlu0 %988 }
 0x2e5   :  { %v994_v57 = vsel %vm193_vm2, %v989_v55, 0 }
 0x2e8   :  { %v876_v56 = vpop.permute.xlu1 %875 }
 0x2e9   :  { %1501 = vmatmul.mubr.msk.bf16.vlgmr.msra.gmra.mrb[8].mxu1 %vm193_vm2, %v414_v45 }
 0x2ea   :  { %1511 = vmatpush3.bf16.xpose.msra.mxu1 %v532_v46  ;;  %1512 = vmatprep.mubr.msk.bf16.mxu1 %vm1811_vm1, %v1810_v15 }
 0x2eb   :  { %1522 = vmatprep.subr.bf16.mxu1 %v1810_v15 }
 0x2ec   :  { %v987_v58 = vpop.permute.xlu1 %986 }
 0x2f0   :  { %v2056_v43 = vpop.permute.xlu1 %365 }
 0x2f1   :  { %1513 = vmatmul.mubr.msk.bf16.vlgmr.msra.gmra.mrb[12].mxu1 %vm193_vm2, %v525_v48 }
 0x2f2   :  { %1523 = vmatpush3.bf16.xpose.msra.mxu1 %v661_v49  ;;  %1524 = vmatprep.mubr.msk.bf16.mxu1 %vm1811_vm1, %v1810_v15 }
 0x2f3   :  { %1534 = vmatprep.subr.bf16.mxu1 %v1810_v15 }
 0x2f9   :  { %1525 = vmatmul.mubr.msk.bf16.vlgmr.msra.gmra.mrb[16].mxu1 %vm193_vm2, %v1981_v36 }
 0x2fa   :  { %1535 = vmatpush3.bf16.xpose.msra.mxu1 %v772_v51  ;;  %1536 = vmatprep.mubr.msk.bf16.mxu1 %vm1811_vm1, %v1810_v15 }
 0x2fb   :  { %1546 = vmatprep.subr.bf16.mxu1 %v1810_v15 }
 0x301   :  { %1537 = vmatmul.mubr.msk.bf16.vlgmr.msra.gmra.mrb[20].mxu1 %vm193_vm2, %v765_v53 }
 0x302   :  { %1547 = vmatpush3.bf16.xpose.msra.mxu1 %v883_v54  ;;  %1548 = vmatprep.mubr.msk.bf16.mxu1 %vm1811_vm1, %v1810_v15 }
 0x303   :  { %1558 = vmatprep.subr.bf16.mxu1 %v1810_v15 }
 0x309   :  { %1549 = vmatmul.mubr.msk.bf16.vlgmr.msra.gmra.mrb[24].mxu1 %vm193_vm2, %v876_v56 }
 0x30a   :  { %1559 = vmatpush3.bf16.xpose.msra.mxu1 %v994_v57  ;;  %1560 = vmatprep.mubr.msk.bf16.mxu1 %vm1811_vm1, %v1810_v15 }
 0x30b   :  { %1570 = vmatprep.subr.bf16.mxu1 %v1810_v15 }
 0x311   :  { %1561 = vmatmul.mubr.msk.bf16.vlgmr.msra.gmra.mrb[28].mxu1 %vm193_vm2, %v987_v58 }
 0x312   :  { %1574 = vmatprep.mubr.msk.bf16.mxu1 %vm1811_vm1, %v1810_v15 }
 0x3ac   :  { %v234_v59 = vpop.f32.mrb[0].mxu1 }
 0x3ad   :  { %v1478_v60 = vpop.f32.mrb[1].mxu1  ;;  %v240_v61 = vsel %vm193_vm2, %v234_v59, -inf }
 0x3ae   :  { %v237_v62 = vpop.f32.mrb[2].mxu1  ;;  %241 = vmax.xlane.f32.xlu0 %v240_v61 }
 0x3af   :  { %v1479_v63 = vpop.f32.mrb[3].mxu1 }
 0x3b4   :  { %v346_v2 = vpop.f32.mrb[4].mxu1 }
 0x3b5   :  { %v1490_v3 = vpop.f32.mrb[5].mxu1  ;;  %v352_v4 = vsel %vm193_vm2, %v346_v2, -inf }
 0x3b6   :  { %v349_v5 = vpop.f32.mrb[6].mxu1  ;;  %353 = vmax.xlane.f32.xlu1 %v352_v4 }
 0x3b7   :  { %v1491_v6 = vpop.f32.mrb[7].mxu1 }
 0x3bc   :  { %v457_v7 = vpop.f32.mrb[8].mxu1 }
 0x3bd   :  { %v1502_v8 = vpop.f32.mrb[9].mxu1  ;;  %v463_v29 = vsel %vm193_vm2, %v457_v7, -inf }
 0x3be   :  { %v460_v9 = vpop.f32.mrb[10].mxu1 }
 0x3bf   :  { %v1503_v10 = vpop.f32.mrb[11].mxu1 }
 0x3c4   :  { %v568_v11 = vpop.f32.mrb[12].mxu1  ;;  %253 = vrot.lane.b32.xlu0 %v1973_v33, %s1803_s23 }
 0x3c5   :  { %v1514_v12 = vpop.f32.mrb[13].mxu1  ;;  %v574_v35 = vsel %vm193_vm2, %v568_v11, -inf }
 0x3c6   :  { %v571_v13 = vpop.f32.mrb[14].mxu1 }
 0x3c7   :  { %v1515_v14 = vpop.f32.mrb[15].mxu1 }
 0x3cc   :  { %v2039_v16 = vpop.f32.mrb[16].mxu1 }
 0x3cd   :  { %v1526_v17 = vpop.f32.mrb[17].mxu1  ;;  %v703_v38 = vsel %vm193_vm2, %v2039_v16, -inf }
 0x3ce   :  { %v700_v18 = vpop.f32.mrb[18].mxu1 }
 0x3cf   :  { %v1527_v19 = vpop.f32.mrb[19].mxu1 }
 0x3d4   :  { %v808_v20 = vpop.f32.mrb[20].mxu1 }
 0x3d5   :  { %v1538_v21 = vpop.f32.mrb[21].mxu1  ;;  %v814_v22 = vsel %vm193_vm2, %v808_v20, -inf }
 0x3d6   :  { %815 = vmax.xlane.f32.xlu1 %v814_v22  ;;  %v811_v23 = vpop.f32.mrb[22].mxu1 }
 0x3d7   :  { %v1539_v24 = vpop.f32.mrb[23].mxu1 }
 0x3dc   :  { %v2042_v25 = vpop.f32.mrb[24].mxu1 }
 0x3dd   :  { %v1550_v26 = vpop.f32.mrb[25].mxu1  ;;  %v925_v39 = vsel %vm193_vm2, %v2042_v25, -inf }
 0x3de   :  { %v922_v27 = vpop.f32.mrb[26].mxu1 }
 0x3df   :  { %v1551_v28 = vpop.f32.mrb[27].mxu1  ;;  %v371_v27 = vsel %vm258_vm3, %v2056_v43, 0 }
 0x3e3   :  { %464 = vmax.xlane.f32.xlu0 %v463_v29 }
 0x3e4   :  { %v2045_v30 = vpop.f32.mrb[28].mxu1 }
 0x3e5   :  { %v1562_v31 = vpop.f32.mrb[29].mxu1  ;;  %v1036_v32 = vsel %vm193_vm2, %v2045_v30, -inf }
 0x3e6   :  { %1037 = vmax.xlane.f32.xlu1 %v1036_v32  ;;  %v1033_v34 = vpop.f32.mrb[30].mxu1 }
 0x3e7   :  { %575 = vmax.xlane.f32.xlu0 %v574_v35  ;;  %v1563_v37 = vpop.f32.mrb[31].mxu1 }
 0x3eb   :  { %704 = vmax.xlane.f32.xlu0 %v703_v38 }
 0x3ef   :  { %926 = vmax.xlane.f32.xlu0 %v925_v39 }
 0x405   :  { %476 = vrot.lane.b32.xlu0 %v1973_v33, %s1820_s28 }
 0x43b   :  { %v242_v40 = vpop.xlane.xlu0 %241 }
 0x43c   :  { %v243_v41 = vsub.f32 %v234_v59, %v242_v40 }
 0x43e   :  { %v244_v42 = vmul.f32 1.442695, %v243_v41 }
 0x43f   :  { %v254_v44 = vpop.permute.xlu0 %253 }
 0x440   :  { %1644 = vpow2.f32 %v244_v42  ;;  %v260_v45 = vsel %vm258_vm3, %v254_v44, 0 }
 0x441   :  { %1481 = vmatpush3.bf16.msra.mxu0 %v260_v45 }
 0x442   :  { %1492 = vmatprep.subr.bf16.mxu0 %v1810_v15 }
 0x443   :  { %v354_v46 = vpop.xlane.xlu1 %353 }
 0x444   :  { %v355_v47 = vsub.f32 %v346_v2, %v354_v46 }
 0x446   :  { %v356_v48 = vmul.f32 1.442695, %v355_v47 }
 0x448   :  { %1646 = vpow2.f32 %v356_v48 }
 0x44a   :  { %v1645_v49 = vpop.eup %1644 }
 0x44b   :  { %v246_v50 = vsel %vm193_vm2, %v1645_v49, 0.0 }
 0x44c   :  { %247 = vadd.xlane.f32.xlu0 %v246_v50 }
 0x452   :  { %v2061_v51 = vpop.eup %1646 }
 0x453   :  { %v358_v52 = vsel %vm193_vm2, %v2061_v51, 0.0 }
 0x454   :  { %359 = vadd.xlane.f32.xlu1 %v358_v52 }
 0x463   :  { %v816_v59 = vpop.xlane.xlu1 %815 }
 0x464   :  { %v817_v62 = vsub.f32 %v808_v20, %v816_v59 }
 0x465   :  { %716 = vrot.lane.b32.xlu1 %v1981_v36, %s1803_s23  ;;  %s1821_s23 = smov 40  }
 0x466   :  { %v818_v3 = vmul.f32 1.442695, %v817_v62 }
 0x470   :  { %v465_v53 = vpop.xlane.xlu0 %464 }
 0x471   :  { %v466_v54 = vsub.f32 %v457_v7, %v465_v53 }
 0x473   :  { %v467_v55 = vmul.f32 1.442695, %v466_v54  ;;  %v1038_v14 = vpop.xlane.xlu1 %1037 }
 0x474   :  { %v576_v56 = vpop.xlane.xlu0 %575 }
 0x475   :  { %1648 = vpow2.f32 %v467_v55  ;;  %v577_v57 = vsub.f32 %v568_v11, %v576_v56 }
 0x477   :  { %v578_v58 = vmul.f32 1.442695, %v577_v57 }
 0x478   :  { %v705_v60 = vpop.xlane.xlu0 %704 }
 0x479   :  { %v706_v61 = vsub.f32 %v2039_v16, %v705_v60  ;;  %1650 = vpow2.f32 %v578_v58  ;;  %v1039_v16 = vsub.f32 %v2045_v30, %v1038_v14 }
 0x47b   :  { %v707_v63 = vmul.f32 1.442695, %v706_v61  ;;  %v1040_v18 = vmul.f32 1.442695, %v1039_v16 }
 0x47c   :  { %v927_v11 = vpop.xlane.xlu0 %926 }
 0x47d   :  { %1652 = vpow2.f32 %v707_v63  ;;  %v928_v12 = vsub.f32 %v2042_v25, %v927_v11 }
 0x47e   :  { %1654 = vpow2.f32 %v818_v3 }
 0x47f   :  { %v1649_v2 = vpop.eup %1648  ;;  %v929_v13 = vmul.f32 1.442695, %v928_v12 }
 0x480   :  { %v469_v4 = vsel %vm193_vm2, %v1649_v2, 0.0  ;;  %v477_v21 = vpop.permute.xlu0 %476 }
 0x481   :  { %470 = vadd.xlane.f32.xlu0 %v469_v4  ;;  %1656 = vpow2.f32 %v929_v13  ;;  %v482_v30 = vsel %vm258_vm3, %v477_v21, 0 }
 0x482   :  { %1658 = vpow2.f32 %v1040_v18 }
 0x483   :  { %v2069_v5 = vpop.eup %1650 }
 0x484   :  { %v580_v6 = vsel %vm193_vm2, %v2069_v5, 0.0 }
 0x487   :  { %v2073_v7 = vpop.eup %1652 }
 0x488   :  { %v709_v8 = vsel %vm193_vm2, %v2073_v7, 0.0  ;;  %v2077_v9 = vpop.eup %1654 }
 0x489   :  { %581 = vadd.xlane.f32.xlu1 %v580_v6  ;;  %v820_v10 = vsel %vm193_vm2, %v2077_v9, 0.0 }
 0x48b   :  { %v2086_v17 = vpop.eup %1656 }
 0x48c   :  { %v931_v19 = vsel %vm193_vm2, %v2086_v17, 0.0 }
 0x48d   :  { %710 = vadd.xlane.f32.xlu1 %v709_v8 }
 0x491   :  { %821 = vadd.xlane.f32.xlu1 %v820_v10 }
 0x497   :  { %587 = vrot.lane.b32.xlu0 %v1973_v33, %s1821_s23  ;;  %v2090_v33 = vpop.eup %1658 }
 0x498   :  { %v1042_v20 = vsel %vm193_vm2, %v2090_v33, 0.0 }
 0x4a2   :  { %827 = vrot.lane.b32.xlu1 %v1981_v36, %s1819_s0 }
 0x4b6   :  { %932 = vadd.xlane.f32.xlu0 %v931_v19 }
 0x4c6   :  { %1043 = vadd.xlane.f32.xlu1 %v1042_v20 }
 0x4cc   :  { %938 = vrot.lane.b32.xlu0 %v1981_v36, %s1820_s28 }
 0x4d7   :  { %1049 = vrot.lane.b32.xlu1 %v1981_v36, %s1821_s23 }
 0x4d9   :  { %v248_v22 = vpop.xlane.xlu0 %247 }
 0x4da   :  { %1660 = vrcp.f32 %v248_v22 }
 0x4e1   :  { %v360_v23 = vpop.xlane.xlu1 %359 }
 0x4e2   :  { %1662 = vrcp.f32 %v360_v23 }
 0x4e4   :  { %v1661_v24 = vpop.eup %1660 }
 0x4e5   :  { %v250_v25 = vmul.f32 %v1661_v24, %v1645_v49  ;;  %v717_v32 = vpop.permute.xlu1 %716 }
 0x4e6   :  { %v722_v50 = vsel %vm258_vm3, %v717_v32, 0 }
 0x4e7   :  { %v252_v26 = vpack.c.bf16 %v250_v25, %v250_v25 }
 0x4e9   :  { %1483 = vmatmul.mubr.msk.bf16.vlgmr.msra.gmra.mrb[4].mxu0 %vm193_vm2, %v252_v26 }
 0x4ea   :  { %1493 = vmatpush3.bf16.msra.mxu0 %v371_v27  ;;  %1494 = vmatprep.mubr.msk.bf16.mxu0 %vm1811_vm1, %v1810_v15 }
 0x4eb   :  { %1504 = vmatprep.subr.bf16.mxu0 %v1810_v15 }
 0x4ec   :  { %v1663_v28 = vpop.eup %1662 }
 0x4ed   :  { %v362_v36 = vmul.f32 %v1663_v28, %v2061_v51 }
 0x4ef   :  { %v364_v29 = vpack.c.bf16 %v362_v36, %v362_v36  ;;  %v363_v42 = vadd.f32 %v362_v36, %v250_v25 }
 0x4f1   :  { %1495 = vmatmul.mubr.msk.bf16.vlgmr.msra.gmra.mrb[8].mxu0 %vm193_vm2, %v364_v29 }
 0x4f2   :  { %1505 = vmatpush3.bf16.msra.mxu0 %v482_v30  ;;  %1506 = vmatprep.mubr.msk.bf16.mxu0 %vm1811_vm1, %v1810_v15 }
 0x4f3   :  { %1516 = vmatprep.subr.bf16.mxu0 %v1810_v15 }
 0x50e   :  { %v471_v31 = vpop.xlane.xlu0 %470 }
 0x50f   :  { %1664 = vrcp.f32 %v471_v31 }
 0x512   :  { %v588_v39 = vpop.permute.xlu0 %587 }
 0x513   :  { %v593_v41 = vsel %vm258_vm3, %v588_v39, 0  ;;  %v1634_v39 = vld [vmem:[#allocation7] sm:$0xff]  }
 0x514   :  { %1571 = vmatpush3.bf16.msra.mxu1 %v1634_v39  ;;  %v1639_v39 = vld [vmem:[#allocation8 + $0x8] sm:$0xff]  }
 0x515   :  { %1572 = vmatprep.subr.bf16.mxu1 %v1810_v15 }
 0x516   :  { %v582_v34 = vpop.xlane.xlu1 %581 }
 0x517   :  { %1666 = vrcp.f32 %v582_v34 }
 0x519   :  { %v1665_v35 = vpop.eup %1664 }
 0x51a   :  { %v473_v37 = vmul.f32 %v1665_v35, %v1649_v2  ;;  %v711_v38 = vpop.xlane.xlu1 %710 }
 0x51b   :  { %1668 = vrcp.f32 %v711_v38 }
 0x51c   :  { %v475_v40 = vpack.c.bf16 %v473_v37, %v473_v37  ;;  %v474_v45 = vadd.f32 %v473_v37, %v363_v42 }
 0x51e   :  { %1507 = vmatmul.mubr.msk.bf16.vlgmr.msra.gmra.mrb[12].mxu0 %vm193_vm2, %v475_v40  ;;  %v822_v43 = vpop.xlane.xlu1 %821 }
 0x51f   :  { %1517 = vmatpush3.bf16.msra.mxu0 %v593_v41  ;;  %1518 = vmatprep.mubr.msk.bf16.mxu0 %vm1811_vm1, %v1810_v15  ;;  %1670 = vrcp.f32 %v822_v43 }
 0x520   :  { %1528 = vmatprep.subr.bf16.mxu0 %v1810_v15 }
 0x521   :  { %v1667_v44 = vpop.eup %1666 }
 0x522   :  { %v584_v46 = vmul.f32 %v1667_v44, %v2069_v5  ;;  %v828_v53 = vpop.permute.xlu1 %827 }
 0x523   :  { %v833_v56 = vsel %vm258_vm3, %v828_v53, 0 }
 0x524   :  { %v585_v47 = vadd.f32 %v584_v46, %v474_v45  ;;  %v586_v48 = vpack.c.bf16 %v584_v46, %v584_v46  ;;  %v1635_v45 = vld [vmem:[#allocation7 + $0x8] sm:$0xff]  }
 0x525   :  { %v1669_v49 = vpop.eup %1668  ;;  %1573 = vmatpush3.bf16.msra.mxu1 %v1635_v45 }
 0x526   :  { %v652_v51 = vmul.f32 0.25, %v585_v47  ;;  %1519 = vmatmul.mubr.msk.bf16.vlgmr.msra.gmra.mrb[16].mxu0 %vm193_vm2, %v586_v48  ;;  %v713_v52 = vmul.f32 %v1669_v49, %v2073_v7  ;;  %1586 = vmatprep.subr.bf16.mxu1 %v1810_v15 }
 0x527   :  { %1529 = vmatpush3.bf16.msra.mxu0 %v722_v50  ;;  %1530 = vmatprep.mubr.msk.bf16.mxu0 %vm1811_vm1, %v1810_v15 }
 0x528   :  { %1113 = vst.msk [vmem:[%s2220_s10] sm:$0xff] %vm193_vm2, %v652_v51  ;;  %1540 = vmatprep.subr.bf16.mxu0 %v1810_v15  ;;  %v715_v54 = vpack.c.bf16 %v713_v52, %v713_v52 }
 0x529   :  { %v1671_v55 = vpop.eup %1670 }
 0x52a   :  { %v824_v57 = vmul.f32 %v1671_v55, %v2077_v9 }
 0x52c   :  { %v826_v58 = vpack.c.bf16 %v824_v57, %v824_v57  ;;  %v825_v6 = vadd.f32 %v824_v57, %v713_v52 }
 0x52e   :  { %1531 = vmatmul.mubr.msk.bf16.vlgmr.msra.gmra.mrb[20].mxu0 %vm193_vm2, %v715_v54 }
 0x52f   :  { %1541 = vmatpush3.bf16.msra.mxu0 %v833_v56  ;;  %1542 = vmatprep.mubr.msk.bf16.mxu0 %vm1811_vm1, %v1810_v15 }
 0x530   :  { %1552 = vmatprep.subr.bf16.mxu0 %v1810_v15 }
 0x536   :  { %1543 = vmatmul.mubr.msk.bf16.vlgmr.msra.gmra.mrb[24].mxu0 %vm193_vm2, %v826_v58 }
 0x537   :  { %1554 = vmatprep.mubr.msk.bf16.mxu0 %vm1811_vm1, %v1810_v15 }
 0x543   :  { %v933_v59 = vpop.xlane.xlu0 %932 }
 0x544   :  { %1672 = vrcp.f32 %v933_v59 }
 0x547   :  { %v939_v60 = vpop.permute.xlu0 %938 }
 0x548   :  { %v944_v61 = vsel %vm258_vm3, %v939_v60, 0 }
 0x549   :  { %1553 = vmatpush3.bf16.msra.mxu0 %v944_v61 }
 0x54a   :  { %1564 = vmatprep.subr.bf16.mxu0 %v1810_v15 }
 0x54e   :  { %v1673_v62 = vpop.eup %1672 }
 0x54f   :  { %v935_v63 = vmul.f32 %v1673_v62, %v2086_v17 }
 0x551   :  { %v937_v2 = vpack.c.bf16 %v935_v63, %v935_v63  ;;  %v936_v8 = vadd.f32 %v935_v63, %v825_v6 }
 0x553   :  { %1555 = vmatmul.mubr.msk.bf16.vlgmr.msra.gmra.mrb[28].mxu0 %vm193_vm2, %v937_v2  ;;  %v1044_v3 = vpop.xlane.xlu1 %1043 }
 0x554   :  { %1674 = vrcp.f32 %v1044_v3  ;;  %1566 = vmatprep.mubr.msk.bf16.mxu0 %vm1811_vm1, %v1810_v15 }
 0x557   :  { %v1050_v4 = vpop.permute.xlu1 %1049 }
 0x558   :  { %v1055_v5 = vsel %vm258_vm3, %v1050_v4, 0 }
 0x559   :  { %1565 = vmatpush3.bf16.msra.mxu0 %v1055_v5  ;;  %v1408_v5 = vld [vmem:[%s2214_s4] ss:$0 sm:$0xff] }
 0x55a   :  { %1578 = vmatprep.subr.bf16.mxu0 %v1810_v15 }
 0x55e   :  { %v1675_v7 = vpop.eup %1674 }
 0x55f   :  { %v1046_v9 = vmul.f32 %v1675_v7, %v2090_v33 }
 0x561   :  { %v1047_v10 = vadd.f32 %v1046_v9, %v936_v8  ;;  %v1048_v11 = vpack.c.bf16 %v1046_v9, %v1046_v9 }
 0x563   :  { %v1112_v12 = vmul.f32 0.25, %v1047_v10  ;;  %1567 = vmatmul.mubr.msk.bf16.vlgmr.msra.gmra.mrb[32].mxu0 %vm193_vm2, %v1048_v11 }
 0x564   :  { %1582 = vmatprep.mubr.msk.bf16.mxu0 %vm1811_vm1, %v1810_v15 }
 0x565   :  { %1114 = vst.msk [vmem:[%s2220_s10 + $0x8] sm:$0xff] %vm193_vm2, %v1112_v12  ;;  %s1822_s10 = smov 16  }
 0x5bc   :  { %v296_v13 = vpop.f32.mrb[4].mxu0 }
 0x5bd   :  { %v1484_v14 = vpop.f32.mrb[5].mxu0 }
 0x5be   :  { %v299_v16 = vpop.f32.mrb[6].mxu0 }
 0x5bf   :  { %v1485_v17 = vpop.f32.mrb[7].mxu0 }
 0x5c4   :  { %v407_v18 = vpop.f32.mrb[8].mxu0 }
 0x5c5   :  { %v1496_v19 = vpop.f32.mrb[9].mxu0 }
 0x5c6   :  { %v410_v33 = vpop.f32.mrb[10].mxu0 }
 0x5c7   :  { %v1497_v20 = vpop.f32.mrb[11].mxu0 }
 0x5f1   :  { %v518_v21 = vpop.f32.mrb[12].mxu0 }
 0x5f2   :  { %v1508_v22 = vpop.f32.mrb[13].mxu0 }
 0x5f3   :  { %v521_v23 = vpop.f32.mrb[14].mxu0 }
 0x5f4   :  { %v1509_v24 = vpop.f32.mrb[15].mxu0 }
 0x5f5   :  { %v1636_v24 = vld [vmem:[%s2215_s5] sm:$0xff]  }
 0x5f6   :  { %1579 = vmatpush3.bf16.msra.mxu0 %v1636_v24 }
 0x5f7   :  { %1580 = vmatprep.subr.bf16.mxu0 %v1810_v15 }
 0x5f9   :  { %v629_v25 = vpop.f32.mrb[16].mxu0 }
 0x5fa   :  { %v1520_v26 = vpop.f32.mrb[17].mxu0 }
 0x5fb   :  { %v632_v27 = vpop.f32.mrb[18].mxu0 }
 0x5fc   :  { %v1521_v28 = vpop.f32.mrb[19].mxu0 }
 0x601   :  { %v758_v36 = vpop.f32.mrb[20].mxu0 }
 0x602   :  { %v1532_v29 = vpop.f32.mrb[21].mxu0 }
 0x603   :  { %v761_v30 = vpop.f32.mrb[22].mxu0 }
 0x604   :  { %v1533_v31 = vpop.f32.mrb[23].mxu0 }
 0x609   :  { %v869_v32 = vpop.f32.mrb[24].mxu0 }
 0x60a   :  { %v1617_v34 = vpack.i.bf16 %v869_v32, %v407_v18  ;;  %v1544_v35 = vpop.f32.mrb[25].mxu0 }
 0x60b   :  { %v872_v37 = vpop.f32.mrb[26].mxu0 }
 0x60c   :  { %1618 = vrot.lane.b32.xlu0 %v1617_v34, %s1807_s14  ;;  %v1545_v38 = vpop.f32.mrb[27].mxu0 }
 0x60d   :  { %v1638_v38 = vld [vmem:[#allocation8] sm:$0xff]  }
 0x626   :  { %v980_v40 = vpop.f32.mrb[28].mxu0 }
 0x627   :  { %v1622_v41 = vpack.i.bf16 %v980_v40, %v518_v21  ;;  %v1556_v42 = vpop.f32.mrb[29].mxu0  ;;  %v1412_v40 = vld [vmem:[%s2216_s6] ss:$0 sm:$0xff] }
 0x628   :  { %v983_v43 = vpop.f32.mrb[30].mxu0 }
 0x629   :  { %1623 = vrot.lane.b32.xlu1 %v1622_v41, %s1822_s10  ;;  %v1557_v44 = vpop.f32.mrb[31].mxu0 }
 0x636   :  { %v1091_v46 = vpop.f32.mrb[32].mxu0 }
 0x637   :  { %v1627_v47 = vpack.i.bf16 %v1091_v46, %v629_v25  ;;  %v1568_v48 = vpop.f32.mrb[33].mxu0  ;;  %v1637_v25 = vld [vmem:[%s2215_s5 + $0x8] sm:$0xff]  }
 0x638   :  { %v1094_v49 = vpop.f32.mrb[34].mxu0  ;;  %1581 = vmatpush3.bf16.msra.mxu0 %v1637_v25 }
 0x639   :  { %1628 = vrot.lane.b32.xlu0 %v1627_v47, %s1823_s19  ;;  %v1569_v50 = vpop.f32.mrb[35].mxu0 }
 0x67e   :  { %v1619_v51 = vpop.permute.xlu0 %1618 }
 0x67f   :  { %v1621_v53 = vunpack.i.h.bf16 %v1619_v51  ;;  %v1620_v54 = vunpack.i.l.bf16 %v1619_v51 }
 0x681   :  { %v1109_v58 = vsel %vm193_vm2, %v758_v36, %v1621_v53  ;;  %v647_v59 = vsel %vm193_vm2, %v296_v13, %v1620_v54 }
 0x69b   :  { %v1624_v52 = vpop.permute.xlu1 %1623 }
 0x69c   :  { %v1626_v55 = vunpack.i.h.bf16 %v1624_v52  ;;  %v1625_v56 = vunpack.i.l.bf16 %v1624_v52 }
 0x69e   :  { %v1110_v62 = vsel %vm648_vm4, %v1109_v58, %v1626_v55  ;;  %v649_v63 = vsel %vm648_vm4, %v647_v59, %v1625_v56  ;;  %v1418_v59 = vld [vmem:[%s2218_s8] ss:$0 sm:$0xff] }
 0x6ab   :  { %v1629_v57 = vpop.permute.xlu0 %1628 }
 0x6ac   :  { %v1631_v60 = vunpack.i.h.bf16 %v1629_v57  ;;  %v1630_v61 = vunpack.i.l.bf16 %v1629_v57 }
 0x6ae   :  { %v1111_v2 = vsel %vm650_vm5, %v1110_v62, %v1631_v60  ;;  %v651_v3 = vsel %vm650_vm5, %v649_v63, %v1630_v61 }
 0x6af   :  { %v1115_v4 = vpack.c.bf16 %v1111_v2, %v651_v3 }
 0x6b1   :  { %1575 = vmatmul.mubr.msk.bf16.vlgmr.msra.gmra.mrb[32].mxu1 %vm93_vm0, %v1115_v4 }
 0x6b2   :  { %1590 = vmatprep.mubr.msk.bf16.mxu1 %vm1811_vm1, %v1810_v15  ;;  %1587 = vmatpush3.bf16.msra.mxu1 %v1638_v38 }
 0x6b3   :  { %1588 = vmatprep.subr.bf16.mxu1 %v1810_v15 }
 0x6b6   :  { %1589 = vmatpush3.bf16.msra.mxu1 %v1639_v39 }
 0x784   :  { %v1176_v6 = vpop.f32.mrb[32].mxu1 }
 0x785   :  { %v1177_v7 = vadd.f32 %v1408_v5, %v1176_v6  ;;  %v1576_v8 = vpop.f32.mrb[33].mxu1 }
 0x786   :  { %v1179_v9 = vpop.f32.mrb[34].mxu1 }
 0x787   :  { %v2162_v10 = vadd.f32 %v1177_v7, %v1947_v0  ;;  %v1180_v11 = vadd.f32 %v1408_v5, %v1179_v9  ;;  %v1577_v12 = vpop.f32.mrb[35].mxu1 }
 0x789   :  { %v2165_v13 = vadd.f32 %v1180_v11, %v1949_v1  ;;  %v1185_v14 = vsel %vm93_vm0, %v2162_v10, 0.0 }
 0x78a   :  { %1186 = vadd.xlane.f32.xlu1 %v1185_v14 }
 0x78b   :  { %v1188_v16 = vsel %vm93_vm0, %v2165_v13, 0.0 }
 0x78c   :  { %1189 = vadd.xlane.f32.xlu0 %v1188_v16 }
 0x817   :  { %v1187_v17 = vpop.xlane.xlu1 %1186 }
 0x818   :  { %v1191_v18 = vmul.f32 0.03125, %v1187_v17 }
 0x819   :  { %v1190_v19 = vpop.xlane.xlu0 %1189 }
 0x81a   :  { %v1193_v33 = vsub.f32 %v2162_v10, %v1191_v18  ;;  %v1192_v0 = vmul.f32 0.03125, %v1190_v19 }
 0x81c   :  { %v1194_v20 = vsub.f32 %v2165_v13, %v1192_v0  ;;  %v1195_v21 = vmul.f32 %v1193_v33, %v1193_v33 }
 0x81e   :  { %v1197_v1 = vsel %vm93_vm0, %v1195_v21, 0.0  ;;  %v1196_v22 = vmul.f32 %v1194_v20, %v1194_v20 }
 0x81f   :  { %1198 = vadd.xlane.f32.xlu0 %v1197_v1 }
 0x820   :  { %v1200_v23 = vsel %vm93_vm0, %v1196_v22, 0.0 }
 0x823   :  { %1201 = vadd.xlane.f32.xlu0 %v1200_v23 }
 0x8ac   :  { %v1199_v26 = vpop.xlane.xlu0 %1198 }
 0x8ad   :  { %v1203_v27 = vmul.f32 0.03125, %v1199_v26 }
 0x8af   :  { %v1205_v28 = vadd.f32 1e-05, %v1203_v27 }
 0x8b0   :  { %v1202_v36 = vpop.xlane.xlu0 %1201 }
 0x8b1   :  { %v1204_v29 = vmul.f32 0.03125, %v1202_v36  ;;  %1676 = vrsqrt.f32 %v1205_v28 }
 0x8b3   :  { %v1206_v30 = vadd.f32 1e-05, %v1204_v29 }
 0x8b5   :  { %1678 = vrsqrt.f32 %v1206_v30 }
 0x8bb   :  { %v1677_v31 = vpop.eup %1676 }
 0x8bc   :  { %v1209_v34 = vmul.f32 %v1677_v31, %v1193_v33 }
 0x8bf   :  { %v1679_v32 = vpop.eup %1678 }
 0x8c0   :  { %v1210_v35 = vmul.f32 %v1679_v32, %v1194_v20 }
 0x8c2   :  { %v1211_v37 = vpack.c.bf16 %v1210_v35, %v1209_v34 }
 0x8c4   :  { %1583 = vmatmul.mubr.msk.bf16.vlgmr.msra.gmra.mrb[36].mxu0 %vm93_vm0, %v1211_v37 }
 0x997   :  { %v1272_v41 = vpop.f32.mrb[36].mxu0 }
 0x998   :  { %v1273_v42 = vadd.f32 %v1412_v40, %v1272_v41  ;;  %v1584_v43 = vpop.f32.mrb[37].mxu0 }
 0x999   :  { %v1275_v44 = vpop.f32.mrb[38].mxu0 }
 0x99a   :  { %v1281_v45 = vmul.f32 1.442695, %v1273_v42  ;;  %v1276_v46 = vadd.f32 %v1412_v40, %v1275_v44  ;;  %v1585_v47 = vpop.f32.mrb[39].mxu0  ;;  %vm1279_vm6 = vcmp.gt.f32.partialorder %v1273_v42, 0.0 }
 0x99c   :  { %1680 = vpow2.f32 %v1281_v45  ;;  %v1283_v48 = vmul.f32 1.442695, %v1276_v46  ;;  %vm1280_vm7 = vcmp.gt.f32.partialorder %v1276_v46, 0.0 }
 0x99e   :  { %1682 = vpow2.f32 %v1283_v48 }
 0x9a6   :  { %v1681_v49 = vpop.eup %1680 }
 0x9a7   :  { %v1416_v50 = vadd.f32 -1.0, %v1681_v49 }
 0x9a8   :  { %v1683_v51 = vpop.eup %1682 }
 0x9a9   :  { %v1287_v15 = vmul.f32 1.6732632, %v1416_v50  ;;  %v1417_v52 = vadd.f32 -1.0, %v1683_v51 }
 0x9ab   :  { %v1289_v53 = vsel %vm1279_vm6, %v1273_v42, %v1287_v15  ;;  %v1288_v54 = vmul.f32 1.6732632, %v1417_v52 }
 0x9ac   :  { %v1291_v56 = vmul.f32 1.050701, %v1289_v53 }
 0x9ad   :  { %v1290_v55 = vsel %vm1280_vm7, %v1276_v46, %v1288_v54 }
 0x9ae   :  { %v1292_v57 = vmul.f32 1.050701, %v1290_v55 }
 0x9b0   :  { %v1293_v58 = vpack.c.bf16 %v1292_v57, %v1291_v56 }
 0x9b2   :  { %1591 = vmatmul.mubr.msk.bf16.vlgmr.msra.gmra.mrb[36].mxu1 %vm93_vm0, %v1293_v58 }
 0xa85   :  { %v1354_v60 = vpop.f32.mrb[36].mxu1 }
 0xa86   :  { %v1355_v61 = vadd.f32 %v1418_v59, %v1354_v60  ;;  %v1592_v62 = vpop.f32.mrb[37].mxu1 }
 0xa87   :  { %v1357_v63 = vpop.f32.mrb[38].mxu1 }
 0xa88   :  { %v1361_v2 = vadd.f32 %v1355_v61, %v2162_v10  ;;  %v1358_v3 = vadd.f32 %v1418_v59, %v1357_v63  ;;  %v1593_v4 = vpop.f32.mrb[39].mxu1 }
 0xa8a   :  { %1363 = vst.msk [vmem:[#allocation10] sm:$0xff] %vm93_vm0, %v1361_v2  ;;  %v1362_v5 = vadd.f32 %v1358_v3, %v2165_v13 }
 0xa8c   :  { %1364 = vst.msk [vmem:[#allocation10 + $0x8] sm:$0xff] %vm93_vm0, %v1362_v5 }
 0xa8d   :  { %1783 = shalt.err (!%p1780_p8)
}
 0xa8e   :  { %s1784_s11 = scalar_lea.hbm %s2219_s9, 256 }
 0xa8f   :  { %p1785_p9 = scmp.ne.s32.totalorder %s2219_s9, %s1784_s11  ;;  %p1788_p10 = scmp.lt.u32.totalorder %s1784_s11, %s2219_s9 }
 0xa91   :  { %p1790_p11 = pnand %p1788_p10, %p1785_p9 }
 0xa93   :  { %1793 = shalt.err (!%p1790_p11)
}
 0xa94   :  { %1376 = dma.vmem_to_hbm [thread:$0]  %s1371_s25, 256, %s2219_s9, [#allocation4], %s1806_s1, %s1806_s1, %s1807_s14  }
 0xa95   :  { %1800 = dma.done.wait [#allocation4], 256  }
 0xa96   :  { %1801 = vsyncadd [#allocation4], 4294967040 }
 0xa97   :  { %1384 = vsyncpa [#allocation3], 1 }
 0xa98   :  { %1385 = vsyncpa [#allocation6], 1 }
 0xa99   :  { %1386 = vsyncpa [#allocation9], 1 }
 0xa9a   :  { %1387 = vsyncpa [#allocation4], 1 }

</bundles_post_ra>
